<compile_context>
chip_gen: v7x
topology: tpu7x:2x2x1
jax: 0.10.0
libtpu: 0.0.40
codegen_flags: <defaults>
</compile_context>

<pallas_src>
from functools import partial

import jax
import jax.numpy as jnp
from jax.experimental import pallas as pl
from jax.experimental.pallas import tpu as pltpu


def _round_up(n, m=128):
    return ((n + m - 1) // m) * m


def _pick_batch_tile(B, target=256):
    """Largest multiple-of-8 divisor of B that is <= target and leaves >=2 grid steps."""
    if B % 8 == 0:
        cap = min(target, max(B // 2, 8))
        cap -= cap % 8
        for bt in range(cap, 0, -8):
            if B % bt == 0:
                return bt
    # Fall back to a single full-array block (always a legal block shape).
    return B


def _im2col_rows(xflat, Bt, T, E, W, pad, Kp):
    """Build im2col windows (Bt, T, Kp) bf16 from flat (Bt, T*E) titles, in registers.

    Window t is the contiguous flat lane slice [(t-pad)*E, (t-pad+W)*E), zero-filled
    where it runs past the title ("same" padding), then zero-padded to Kp lanes.
    """
    WE = W * E
    rows = []
    for t in range(T):                                   # tiny static unroll
        lo, hi = (t - pad) * E, (t - pad + W) * E
        clo, chi = max(lo, 0), min(hi, T * E)
        pieces = []
        if clo > lo:
            pieces.append(jnp.zeros((Bt, clo - lo), xflat.dtype))
        if chi > clo:
            pieces.append(xflat[:, clo:chi])
        if hi > chi:
            pieces.append(jnp.zeros((Bt, hi - chi), xflat.dtype))
        if Kp > WE:
            pieces.append(jnp.zeros((Bt, Kp - WE), xflat.dtype))
        rows.append(jnp.concatenate(pieces, axis=-1) if len(pieces) > 1 else pieces[0])
    return jnp.stack(rows, axis=1)                       # (Bt, T, Kp)


def _news_encoder_kernel(x_ref, wcol_ref, bconv_ref, watt_ref, batt_ref, q_ref,
                         out_ref, *, T, E, W, pad, Kp):
    """Fused conv(im2col) + ReLU + additive attention over one batch tile.

    x_ref    : (Bt, T*E)  bf16  embedded titles, lane-dense flat rows
    wcol_ref : (Kp, Fp)   bf16  conv weight, im2col layout, zero-padded
    bconv_ref: (1, Fp)    f32   conv bias (zero-padded)
    watt_ref : (Fp, Qp)   bf16  attention linear weight (zero-padded)
    batt_ref : (1, Qp)    f32   attention linear bias (zero-padded)
    q_ref    : (1, Qp)    f32   attention query vector (zero-padded)
    out_ref  : (Bt, Fp)   f32   output block (padded cols are exact zeros)
    """
    Bt = x_ref.shape[0]
    Fp = wcol_ref.shape[1]

    # ---- im2col in registers (bf16, no scratch, no zero-fill pass)
    xcol = _im2col_rows(x_ref[...], Bt, T, E, W, pad, Kp).reshape(Bt * T, Kp)

    # ---- Conv2d(1, F, (W, E), padding=((W-1)//2, 0)) == one MXU matmul; then ReLU
    conv = jnp.dot(xcol, wcol_ref[...], preferred_element_type=jnp.float32)
    act = jnp.maximum(conv + bconv_ref[...], 0.0)        # (Bt*T, Fp) f32

    # ---- AdditiveAttention: tanh(act @ W + b) . q -> softmax over T -> weighted sum
    proj = jnp.dot(act.astype(jnp.bfloat16), watt_ref[...],
                   preferred_element_type=jnp.float32) + batt_ref[...]
    temp = jnp.tanh(proj)                                # (Bt*T, Qp) f32
    scores = jnp.sum(temp * q_ref[...], axis=-1, keepdims=True).reshape(Bt, T, 1)
    scores = scores - jnp.max(scores, axis=1, keepdims=True)
    e = jnp.exp(scores)
    attn = e * pl.reciprocal(jnp.sum(e, axis=1, keepdims=True), approx=True)

    # single full-lane-width block store per grid step
    out_ref[...] = jnp.sum(attn * act.reshape(Bt, T, Fp), axis=1)


def news_encoder(title_ids, word_embedding, conv_w, conv_b, att_w, att_b, att_q,
                 window_size, *, batch_tile_target=256):
    """NewsEncoder forward (eval mode). Returns (batch_size, num_filters) float32."""
    B, T = title_ids.shape
    W = int(window_size)
    assert W >= 1 and W % 2 == 1, "window_size must be odd (as asserted in the PyTorch module)"
    pad = (W - 1) // 2
    E = word_embedding.shape[1]
    F_ = conv_w.shape[-1]
    Q = att_w.shape[-1]

    Kp, Fp, Qp = _round_up(W * E), _round_up(F_), _round_up(Q)

    # Glue: embedding lookup outside the kernel; flat lane-dense bf16 rows for the MXU.
    emb = word_embedding[title_ids].astype(jnp.bfloat16).reshape(B, T * E)   # (B, T*E)

    # MXU-aligned, zero-padded weights; padding propagates exact zeros so the
    # extra output columns are zero and are sliced off below.
    wcol = jnp.zeros((Kp, Fp), jnp.bfloat16).at[:W * E, :F_].set(
        conv_w.reshape(W * E, F_).astype(jnp.bfloat16))
    bconv = jnp.zeros((1, Fp), jnp.float32).at[:, :F_].set(conv_b.astype(jnp.float32)[None, :])
    watt = jnp.zeros((Fp, Qp), jnp.bfloat16).at[:F_, :Q].set(att_w.astype(jnp.bfloat16))
    batt = jnp.zeros((1, Qp), jnp.float32).at[:, :Q].set(att_b.astype(jnp.float32)[None, :])
    qvec = jnp.zeros((1, Qp), jnp.float32).at[:, :Q].set(att_q.astype(jnp.float32)[None, :])

    # Batch tile: big enough to fill MXU rows and amortize the ~0.35us/step
    # overhead, but keeping >=2 grid steps so "parallel" can split across cores.
    # VMEM is not the constraint at this model size on any generation, so the
    # same tiling is used for v5e/v6e/v7x with an explicit vmem limit.
    Bt = _pick_batch_tile(B, batch_tile_target)
    grid = (B // Bt,)

    cost = pl.CostEstimate(
        flops=2 * B * T * (Kp * Fp + Fp * Qp),
        transcendentals=B * T * (Qp + 1),
        bytes_accessed=B * T * E * 2 + (Kp * Fp + Fp * Qp) * 2 + B * Fp * 4,
    )

    rep = lambda shape: pl.BlockSpec(shape, lambda i: (0,) * len(shape))
    out_padded = pl.pallas_call(
        partial(_news_encoder_kernel, T=T, E=E, W=W, pad=pad, Kp=Kp),
        out_shape=jax.ShapeDtypeStruct((B, Fp), jnp.float32),
        grid=grid,
        in_specs=[
            pl.BlockSpec((Bt, T * E), lambda i: (i, 0)),     # batch-tiled activations
            rep((Kp, Fp)),                                   # replicated weights
            rep((1, Fp)),
            rep((Fp, Qp)),
            rep((1, Qp)),
            rep((1, Qp)),
        ],
        out_specs=pl.BlockSpec((Bt, Fp), lambda i: (i, 0)),
        compiler_params=pltpu.CompilerParams(
            dimension_semantics=("parallel",),
            vmem_limit_bytes=32 * 1024 * 1024),
        cost_estimate=cost,
    )(emb, wcol, bconv, watt, batt, qvec)

    return out_padded[:, :F_]


def _reference(title_ids, word_embedding, conv_w, conv_b, att_w, att_b, att_q, W):
    """Pure-JAX (f32) reference mirroring the PyTorch forward in eval mode."""
    emb = word_embedding[title_ids].astype(jnp.float32)          # (B, T, E)
    pad = (W - 1) // 2
    T = title_ids.shape[1]
    xpad = jnp.pad(emb, ((0, 0), (pad, pad), (0, 0)))
    conv = conv_b[None, None, :]
    for w in range(W):
        conv = conv + jnp.einsum('bte,ef->btf', xpad[:, w:w + T, :], conv_w[w])
    act = jnp.maximum(conv, 0.0)                                 # (B, T, F)
    temp = jnp.tanh(jnp.einsum('btf,fq->btq', act, att_w) + att_b)
    scores = jnp.einsum('btq,q->bt', temp, att_q)
    attn = jax.nn.softmax(scores, axis=1)
    return jnp.einsum('bt,btf->bf', attn, act)


if __name__ == "__main__":
    # config: num_words=50, word_embedding_dim=32, num_filters=16,
    #         window_size=3, query_vector_dim=32, dropout (eval -> identity)
    num_words, E, F_, W, Q = 50, 32, 16, 3, 32
    B, T = 16, 8                                 # B=16 -> batch tile 8, grid=(2,)

    key = jax.random.PRNGKey(0)
    k1, k2, k3, k4, k5, k6, k7 = jax.random.split(key, 7)

    word_emb = 0.1 * jax.random.normal(k1, (num_words, E), jnp.float32)
    word_emb = word_emb.at[0].set(0.0)                           # padding_idx=0
    conv_w = jax.random.normal(k2, (W, E, F_), jnp.float32) / jnp.sqrt(W * E)
    conv_b = 0.01 * jax.random.normal(k3, (F_,), jnp.float32)
    att_w = jax.random.normal(k4, (F_, Q), jnp.float32) / jnp.sqrt(F_)
    att_b = 0.01 * jax.random.normal(k5, (Q,), jnp.float32)
    att_q = jax.random.uniform(k6, (Q,), jnp.float32, minval=-0.1, maxval=0.1)
    title = jax.random.randint(k7, (B, T), 0, num_words)         # stories['title']

    out = news_encoder(title, word_emb, conv_w, conv_b, att_w, att_b, att_q, W)
    out = jax.block_until_ready(out)
    assert out.shape == (B, F_), out.shape

    ref = _reference(title, word_emb, conv_w, conv_b, att_w, att_b, att_q, W)
    assert jnp.allclose(out, ref, atol=3e-2, rtol=3e-2), (out, ref)

    print("KERNEL_OK")
</pallas_src>

<mosaic_0001>
module attributes {stable_mosaic.version = 11 : i64} {
  func.func @_news_encoder_kernel(%arg0: i32, %arg1: memref<8x256xbf16, #tpu.memory_space<vmem>>, %arg2: memref<128x128xbf16, #tpu.memory_space<vmem>>, %arg3: memref<1x128xf32, #tpu.memory_space<vmem>>, %arg4: memref<128x128xbf16, #tpu.memory_space<vmem>>, %arg5: memref<1x128xf32, #tpu.memory_space<vmem>>, %arg6: memref<1x128xf32, #tpu.memory_space<vmem>>, %arg7: memref<8x128xf32, #tpu.memory_space<vmem>>) attributes {dimension_semantics = [#tpu.dimension_semantics<parallel>], iteration_bounds = array<i64: 2>, scalar_prefetch = 0 : i64, scratch_operands = 0 : i64, tpu.core_type = #tpu.core_type<tc>, window_params = [{transform_indices = @transform_0, window_bounds = array<i64: 8, 256>}, {pipeline_mode = #tpu.pipeline_mode<synchronous>, transform_indices = @transform_1, window_bounds = array<i64: 128, 128>}, {pipeline_mode = #tpu.pipeline_mode<synchronous>, transform_indices = @transform_2, window_bounds = array<i64: 1, 128>}, {pipeline_mode = #tpu.pipeline_mode<synchronous>, transform_indices = @transform_3, window_bounds = array<i64: 128, 128>}, {pipeline_mode = #tpu.pipeline_mode<synchronous>, transform_indices = @transform_4, window_bounds = array<i64: 1, 128>}, {pipeline_mode = #tpu.pipeline_mode<synchronous>, transform_indices = @transform_5, window_bounds = array<i64: 1, 128>}, {transform_indices = @transform_6, window_bounds = array<i64: 8, 128>}]} {
    %c0 = arith.constant 0 : index
    %c0_0 = arith.constant 0 : index
    %0 = vector.load %arg1[%c0, %c0_0] : memref<8x256xbf16, #tpu.memory_space<vmem>>, vector<8x256xbf16>
    %cst = arith.constant 0.000000e+00 : bf16
    %1 = vector.broadcast %cst : bf16 to vector<8x32xbf16>
    %2 = vector.extract_strided_slice %0 {offsets = [0, 0], sizes = [8, 64], strides = [1, 1]} : vector<8x256xbf16> to vector<8x64xbf16>
    %cst_1 = arith.constant 0.000000e+00 : bf16
    %3 = vector.broadcast %cst_1 : bf16 to vector<8x32xbf16>
    %4 = tpu.concatenate %1, %2, %3 in 1 : vector<8x32xbf16>, vector<8x64xbf16>, vector<8x32xbf16> -> vector<8x128xbf16>
    %5 = vector.extract_strided_slice %0 {offsets = [0, 0], sizes = [8, 96], strides = [1, 1]} : vector<8x256xbf16> to vector<8x96xbf16>
    %cst_2 = arith.constant 0.000000e+00 : bf16
    %6 = vector.broadcast %cst_2 : bf16 to vector<8x32xbf16>
    %7 = tpu.concatenate %5, %6 in 1 : vector<8x96xbf16>, vector<8x32xbf16> -> vector<8x128xbf16>
    %8 = vector.extract_strided_slice %0 {offsets = [0, 32], sizes = [8, 96], strides = [1, 1]} : vector<8x256xbf16> to vector<8x96xbf16>
    %cst_3 = arith.constant 0.000000e+00 : bf16
    %9 = vector.broadcast %cst_3 : bf16 to vector<8x32xbf16>
    %10 = tpu.concatenate %8, %9 in 1 : vector<8x96xbf16>, vector<8x32xbf16> -> vector<8x128xbf16>
    %11 = vector.extract_strided_slice %0 {offsets = [0, 64], sizes = [8, 96], strides = [1, 1]} : vector<8x256xbf16> to vector<8x96xbf16>
    %cst_4 = arith.constant 0.000000e+00 : bf16
    %12 = vector.broadcast %cst_4 : bf16 to vector<8x32xbf16>
    %13 = tpu.concatenate %11, %12 in 1 : vector<8x96xbf16>, vector<8x32xbf16> -> vector<8x128xbf16>
    %14 = vector.extract_strided_slice %0 {offsets = [0, 96], sizes = [8, 96], strides = [1, 1]} : vector<8x256xbf16> to vector<8x96xbf16>
    %cst_5 = arith.constant 0.000000e+00 : bf16
    %15 = vector.broadcast %cst_5 : bf16 to vector<8x32xbf16>
    %16 = tpu.concatenate %14, %15 in 1 : vector<8x96xbf16>, vector<8x32xbf16> -> vector<8x128xbf16>
    %17 = vector.extract_strided_slice %0 {offsets = [0, 128], sizes = [8, 96], strides = [1, 1]} : vector<8x256xbf16> to vector<8x96xbf16>
    %cst_6 = arith.constant 0.000000e+00 : bf16
    %18 = vector.broadcast %cst_6 : bf16 to vector<8x32xbf16>
    %19 = tpu.concatenate %17, %18 in 1 : vector<8x96xbf16>, vector<8x32xbf16> -> vector<8x128xbf16>
    %20 = vector.extract_strided_slice %0 {offsets = [0, 160], sizes = [8, 96], strides = [1, 1]} : vector<8x256xbf16> to vector<8x96xbf16>
    %cst_7 = arith.constant 0.000000e+00 : bf16
    %21 = vector.broadcast %cst_7 : bf16 to vector<8x32xbf16>
    %22 = tpu.concatenate %20, %21 in 1 : vector<8x96xbf16>, vector<8x32xbf16> -> vector<8x128xbf16>
    %23 = vector.extract_strided_slice %0 {offsets = [0, 192], sizes = [8, 64], strides = [1, 1]} : vector<8x256xbf16> to vector<8x64xbf16>
    %cst_8 = arith.constant 0.000000e+00 : bf16
    %24 = vector.broadcast %cst_8 : bf16 to vector<8x32xbf16>
    %cst_9 = arith.constant 0.000000e+00 : bf16
    %25 = vector.broadcast %cst_9 : bf16 to vector<8x32xbf16>
    %26 = tpu.concatenate %23, %24, %25 in 1 : vector<8x64xbf16>, vector<8x32xbf16>, vector<8x32xbf16> -> vector<8x128xbf16>
    %27 = vector.shape_cast %4 : vector<8x128xbf16> to vector<8x1x128xbf16>
    %28 = vector.shape_cast %7 : vector<8x128xbf16> to vector<8x1x128xbf16>
    %29 = vector.shape_cast %10 : vector<8x128xbf16> to vector<8x1x128xbf16>
    %30 = vector.shape_cast %13 : vector<8x128xbf16> to vector<8x1x128xbf16>
    %31 = vector.shape_cast %16 : vector<8x128xbf16> to vector<8x1x128xbf16>
    %32 = vector.shape_cast %19 : vector<8x128xbf16> to vector<8x1x128xbf16>
    %33 = vector.shape_cast %22 : vector<8x128xbf16> to vector<8x1x128xbf16>
    %34 = vector.shape_cast %26 : vector<8x128xbf16> to vector<8x1x128xbf16>
    %35 = tpu.concatenate %27, %28, %29, %30, %31, %32, %33, %34 in 1 : vector<8x1x128xbf16>, vector<8x1x128xbf16>, vector<8x1x128xbf16>, vector<8x1x128xbf16>, vector<8x1x128xbf16>, vector<8x1x128xbf16>, vector<8x1x128xbf16>, vector<8x1x128xbf16> -> vector<8x8x128xbf16>
    %36 = vector.shape_cast %35 : vector<8x8x128xbf16> to vector<64x128xbf16>
    %c0_10 = arith.constant 0 : index
    %c0_11 = arith.constant 0 : index
    %37 = vector.load %arg2[%c0_10, %c0_11] : memref<128x128xbf16, #tpu.memory_space<vmem>>, vector<128x128xbf16>
    %cst_12 = arith.constant dense<0.000000e+00> : vector<64x128xf32>
    %38 = tpu.matmul %36, %37, %cst_12 {dimension_numbers = #tpu.dot_dimension_numbers<[1], [0], [0], [1], [0, 0, 1, 1], [], []>} : vector<64x128xbf16>, vector<128x128xbf16>, vector<64x128xf32> -> vector<64x128xf32>
    %c0_13 = arith.constant 0 : index
    %c0_14 = arith.constant 0 : index
    %39 = vector.load %arg3[%c0_13, %c0_14] : memref<1x128xf32, #tpu.memory_space<vmem>>, vector<1x128xf32>
    %40 = vector.broadcast %39 : vector<1x128xf32> to vector<64x128xf32>
    %41 = arith.addf %38, %40 : vector<64x128xf32>
    %cst_15 = arith.constant 0.000000e+00 : f32
    %42 = vector.broadcast %cst_15 : f32 to vector<64x128xf32>
    %43 = arith.maximumf %41, %42 : vector<64x128xf32>
    %44 = arith.truncf %43 : vector<64x128xf32> to vector<64x128xbf16>
    %c0_16 = arith.constant 0 : index
    %c0_17 = arith.constant 0 : index
    %45 = vector.load %arg4[%c0_16, %c0_17] : memref<128x128xbf16, #tpu.memory_space<vmem>>, vector<128x128xbf16>
    %cst_18 = arith.constant dense<0.000000e+00> : vector<64x128xf32>
    %46 = tpu.matmul %44, %45, %cst_18 {dimension_numbers = #tpu.dot_dimension_numbers<[1], [0], [0], [1], [0, 0, 1, 1], [], []>} : vector<64x128xbf16>, vector<128x128xbf16>, vector<64x128xf32> -> vector<64x128xf32>
    %c0_19 = arith.constant 0 : index
    %c0_20 = arith.constant 0 : index
    %47 = vector.load %arg5[%c0_19, %c0_20] : memref<1x128xf32, #tpu.memory_space<vmem>>, vector<1x128xf32>
    %48 = vector.broadcast %47 : vector<1x128xf32> to vector<64x128xf32>
    %49 = arith.addf %46, %48 : vector<64x128xf32>
    %50 = math.tanh %49 : vector<64x128xf32>
    %c0_21 = arith.constant 0 : index
    %c0_22 = arith.constant 0 : index
    %51 = vector.load %arg6[%c0_21, %c0_22] : memref<1x128xf32, #tpu.memory_space<vmem>>, vector<1x128xf32>
    %52 = vector.broadcast %51 : vector<1x128xf32> to vector<64x128xf32>
    %53 = arith.mulf %50, %52 : vector<64x128xf32>
    %cst_23 = arith.constant dense<0.000000e+00> : vector<64xf32>
    %54 = vector.multi_reduction <add>, %53, %cst_23 [1] : vector<64x128xf32> to vector<64xf32>
    %55 = vector.shape_cast %54 : vector<64xf32> to vector<64x1xf32>
    %56 = vector.shape_cast %55 : vector<64x1xf32> to vector<8x8x1xf32>
    %cst_24 = arith.constant dense<0xFF800000> : vector<8x1xf32>
    %57 = vector.multi_reduction <maximumf>, %56, %cst_24 [1] : vector<8x8x1xf32> to vector<8x1xf32>
    %58 = vector.shape_cast %57 : vector<8x1xf32> to vector<8x1x1xf32>
    %59 = vector.broadcast %58 : vector<8x1x1xf32> to vector<8x8x1xf32>
    %60 = arith.subf %56, %59 : vector<8x8x1xf32>
    %61 = math.exp %60 : vector<8x8x1xf32>
    %cst_25 = arith.constant dense<0.000000e+00> : vector<8x1xf32>
    %62 = vector.multi_reduction <add>, %61, %cst_25 [1] : vector<8x8x1xf32> to vector<8x1xf32>
    %63 = vector.shape_cast %62 : vector<8x1xf32> to vector<8x1x1xf32>
    %64 = tpu.reciprocal %63 {approx = true} : vector<8x1x1xf32> -> vector<8x1x1xf32>
    %65 = vector.broadcast %64 : vector<8x1x1xf32> to vector<8x8x1xf32>
    %66 = arith.mulf %61, %65 : vector<8x8x1xf32>
    %67 = vector.shape_cast %43 : vector<64x128xf32> to vector<8x8x128xf32>
    %68 = vector.broadcast %66 : vector<8x8x1xf32> to vector<8x8x128xf32>
    %69 = arith.mulf %68, %67 : vector<8x8x128xf32>
    %cst_26 = arith.constant dense<0.000000e+00> : vector<8x128xf32>
    %70 = vector.multi_reduction <add>, %69, %cst_26 [1] : vector<8x8x128xf32> to vector<8x128xf32>
    %c0_27 = arith.constant 0 : index
    %c0_28 = arith.constant 0 : index
    %71 = vector.load %arg7[%c0_27, %c0_28] : memref<8x128xf32, #tpu.memory_space<vmem>>, vector<8x128xf32>
    tpu.vector_store %arg7[%c0_27, %c0_28], %70 {strides = array<i32>} : memref<8x128xf32, #tpu.memory_space<vmem>>, vector<8x128xf32>,
    return
  }
  func.func @transform_0(%arg0: i32) -> (i32, i32) {
    %c0_i32 = arith.constant 0 : i32
    %c0_i32_0 = arith.constant 0 : i32
    return %arg0, %c0_i32 : i32, i32
  }
  func.func @transform_1(%arg0: i32) -> (i32, i32) {
    %c0_i32 = arith.constant 0 : i32
    %c0_i32_0 = arith.constant 0 : i32
    %c0_i32_1 = arith.constant 0 : i32
    return %c0_i32, %c0_i32_0 : i32, i32
  }
  func.func @transform_2(%arg0: i32) -> (i32, i32) {
    %c0_i32 = arith.constant 0 : i32
    %c0_i32_0 = arith.constant 0 : i32
    %c0_i32_1 = arith.constant 0 : i32
    return %c0_i32, %c0_i32_0 : i32, i32
  }
  func.func @transform_3(%arg0: i32) -> (i32, i32) {
    %c0_i32 = arith.constant 0 : i32
    %c0_i32_0 = arith.constant 0 : i32
    %c0_i32_1 = arith.constant 0 : i32
    return %c0_i32, %c0_i32_0 : i32, i32
  }
  func.func @transform_4(%arg0: i32) -> (i32, i32) {
    %c0_i32 = arith.constant 0 : i32
    %c0_i32_0 = arith.constant 0 : i32
    %c0_i32_1 = arith.constant 0 : i32
    return %c0_i32, %c0_i32_0 : i32, i32
  }
  func.func @transform_5(%arg0: i32) -> (i32, i32) {
    %c0_i32 = arith.constant 0 : i32
    %c0_i32_0 = arith.constant 0 : i32
    %c0_i32_1 = arith.constant 0 : i32
    return %c0_i32, %c0_i32_0 : i32, i32
  }
  func.func @transform_6(%arg0: i32) -> (i32, i32) {
    %c0_i32 = arith.constant 0 : i32
    %c0_i32_0 = arith.constant 0 : i32
    return %arg0, %c0_i32 : i32, i32
  }
}

</mosaic_0001>

<bundles_post_ra>
// kernel: tpu_custom_call.1
= control target key start
LH: loop header
LB: loop body
LE: loop exit
PB: predicated region body
PF: predicated region fallthrough
CT: control target
= control target key end

     0   :  { %11 = vsyncpa [#allocation3], 0  ;;  %s3069_s0 = inlined_call_operand.hbm [shape: bf16[16,256], index: 0, kind: input, shape index: {}]   ;;  %s3070_s1 = inlined_call_operand.hbm [shape: bf16[128,128], index: 1, kind: input, shape index: {}]   ;;  %s3071_s2 = inlined_call_operand.vmem [shape: f32[1,128], index: 2, kind: input, shape index: {}]   ;;  %s3072_s3 = inlined_call_operand.hbm [shape: bf16[128,128], index: 3, kind: input, shape index: {}]   ;;  %s3073_s4 = inlined_call_operand.vmem [shape: f32[1,128], index: 4, kind: input, shape index: {}]   ;;  %s3074_s5 = inlined_call_operand.vmem [shape: f32[1,128], index: 5, kind: input, shape index: {}]   ;;  %s3075_s6 = inlined_call_operand.hbm [shape: f32[16,128], index: 6, kind: output, shape index: {}]  }
   0x1   :  { %13 = vsyncpa [#allocation3 + $0x1], 0 }
   0x2   :  { %14 = vsyncpa [#allocation6], 0 }
   0x3   :  { %15 = vsyncpa [#allocation4], 0 }
   0x4   :  { %17 = vsyncpa [#allocation4 + $0x1], 0  ;;  %s2264_s21 = smov 0   ;;  %s2266_s22 = smov 0  }
   0x5   :  { %s2268_s23 = smov 0   ;;  %s2270_s24 = smov 0  }
   0x6 LB: > { %s2285_s25 = sadd.s32 4294967295, %s2217_s24   ;;  %s1775_s26 = sadd.s32 4294967294, %s2217_s24   ;;  %s2217_s24 = sphi %s2270_s24, %s3145_s24   ;;  %s2213_s23 = sphi %s2268_s23, %s3144_s23   ;;  %s2209_s22 = sphi %s2266_s22, %s3143_s22   ;;  %s2205_s21 = sphi %s2264_s21, %s3142_s21  }
   0x7   : > { %p43_p0 = scmp.ne.s32.totalorder %s2209_s22, %s2205_s21  ;;  %p3076_p1 = scmp.eq.s32.totalorder %s2285_s25, 0 }
   0x8   : > { %p178_p3 = scmp.eq.s32.totalorder %s1775_s26, 1  ;;  %p1776_p5 = scmp.ge.s32.totalorder %s2217_s24, 1 }
   0x9   : > { %p2294_p4 = por %p3076_p1, %p43_p0  ;;  %p185_p7 = scmp.lt.s32.totalorder %s2217_s24, 3 }
   0xa   : > { %p2299_p6 = por %p178_p3, %p43_p0  ;;  %s2219_s30 = smov [#allocation5]  }
   0xb   : > { %s3083_s27 = scalar_select %p2294_p4, 1, 0 }
   0xc   : > { %s3084_s28 = scalar_select %p2299_p6, 1, 0 }
   0xd   : > { %p2304_p8 = pnand %p1776_p5, %p185_p7  ;;  %s197_s7 = sshll.u32 %s2219_s30, 4  ;;  %s2308_s7 = int_to_ptr.vmem [resolvable:$true] %s197_s7 }
   0xe   : > { %s2220_s9 = smov [#allocation7]   ;;  %s2061_s13 = scalar_lea.hbm %s3070_s1, 1024 }
   0xf   : > { %p1934_p9 = pneg %p2304_p8  ;;  %s213_s10 = sshll.u32 %s2220_s9, 4  ;;  %s2319_s10 = int_to_ptr.vmem [resolvable:$true] %s213_s10 }
  0x10   : > { %p2062_p12 = scmp.ne.s32.totalorder %s3070_s1, %s2061_s13  ;;  %p2068_p5 = scmp.lt.u32.totalorder %s2061_s13, %s3070_s1 }
  0x11   : > { %p2315_p11 = pnand %p1934_p9, %p3076_p1 }
  0x13   : > { %p2063_p13 = pneg %p2315_p11 }
  0x15   : > { %p2064_p0 = pnand %p2063_p13, %p2062_p12 }
  0x17   : > { %p2065_p3 = pneg %p2064_p0 }
  0x19   : > { %p2070_p7 = pnand %p2068_p5, %p2065_p3 }
  0x1b   : > { %2073 = shalt.err (!%p2070_p7)
}
  0x1c   : > { %s2074_s18 = scalar_lea.vmem %s2308_s7, 1024  ;;  %p2082_p2 = scmp.lt.s32.totalorder %s2308_s7, %s2308_s7 }
  0x1d   : > { %p2075_p9 = scmp.ne.s32.totalorder %s2308_s7, %s2074_s18  ;;  %p2083_p12 = scmp.lt.s32.totalorder %s2074_s18, %s2074_s18 }
  0x1f   : > { %p2077_p10 = pnand %p2075_p9, %p2063_p13  ;;  %p2084_p0 = por %p2083_p12, %p2082_p2 }
  0x21   : > { %p2078_p1 = pneg %p2077_p10 }
  0x23   : > { %p2085_p6 = pnand %p2084_p0, %p2078_p1 }
  0x25   : > { %2088 = shalt.err (!%p2085_p6)
}
  0x26   : > { %s2221_s19 = smov 64   ;;  %s2222_s20 = smov 4  }
  0x27   : > { %1937 = dma.hbm_to_vmem [thread:$0]  (!%p2315_p11), %s3070_s1, 1024, %s2308_s7, [#allocation6], %s2221_s19, %s2221_s19, %s2222_s20  }
  0x28   : > { %s2089_s12 = scalar_lea.hbm %s3072_s3, 1024 }
  0x29   : > { %p2090_p2 = scmp.ne.s32.totalorder %s3072_s3, %s2089_s12  ;;  %p2096_p10 = scmp.lt.u32.totalorder %s2089_s12, %s3072_s3 }
  0x2b   : > { %p2092_p1 = pnand %p2090_p2, %p2063_p13 }
  0x2d   : > { %p2093_p6 = pneg %p2092_p1 }
  0x2f   : > { %p2098_p3 = pnand %p2096_p10, %p2093_p6 }
  0x31   : > { %2101 = shalt.err (!%p2098_p3)
}
  0x32   : > { %s2102_s7 = scalar_lea.vmem %s2319_s10, 1024  ;;  %p2110_p12 = scmp.lt.s32.totalorder %s2319_s10, %s2319_s10 }
  0x33   : > { %p2103_p5 = scmp.ne.s32.totalorder %s2319_s10, %s2102_s7  ;;  %p2111_p0 = scmp.lt.s32.totalorder %s2102_s7, %s2102_s7 }
  0x35   : > { %p2105_p7 = pnand %p2103_p5, %p2063_p13  ;;  %p2112_p2 = por %p2111_p0, %p2110_p12 }
  0x37   : > { %p2106_p9 = pneg %p2105_p7 }
  0x39   : > { %p2113_p1 = pnand %p2112_p2, %p2106_p9 }
  0x3b   : > { %2116 = shalt.err (!%p2113_p1)
}
  0x3c   : > { %1940 = dma.hbm_to_vmem [thread:$0]  (!%p2315_p11), %s3072_s3, 1024, %s2319_s10, [#allocation6], %s2221_s19, %s2221_s19, %s2222_s20  }
  0x3d   : > { %s2374_s26 = sadd.s32 1, %s2217_s24   ;;  %s30_s8 = sadd.s32 1, %s2213_s23 }
  0x3e   : > { %s27_s30 = ssub.s32 %s2217_s24, %s2374_s26  ;;  %p37_p13 = scmp.ne.s32.totalorder %s2213_s23, %s2209_s22 }
  0x3f   : > { %p28_p6 = scmp.eq.s32.totalorder %s27_s30, 0  ;;  %p38_p10 = scmp.eq.s32.totalorder %s2217_s24, 0 }
  0x40   : > { %p3087_p3 = scmp.eq.s32.totalorder %s2285_s25, 1  ;;  %p1951_p7 = scmp.lt.s32.totalorder %s2217_s24, 2 }
  0x41   : > { %s2390_s11 = scalar_select %p28_p6, %s2213_s23, %s30_s8  }
  0x42   : > { %p2384_p5 = por %p3087_p3, %p37_p13  ;;  %p39_p9 = por %p38_p10, %p37_p13 }
  0x43   : > { %s233_s12 = sand.u32 1, %s2213_s23   ;;  %s1849_s10 = sshll.u32 %s2217_s24, 7 }
  0x44   : > { %s3088_s9 = scalar_select %p2384_p5, 1, 0 }
  0x45   : > { %s1780_s13 = sshll.u32 %s233_s12, 3  ;;  %s2397_s14 = scalar_lea.hbm %s3069_s0, %s1849_s10 }
  0x46   : > { %s237_s15 = scalar_lea.vmem [#allocation2], %s1780_s13  ;;  %p2401_p11 = pnand %p1951_p7, %p39_p9 }
  0x47   : > { %s245_s16 = sshll.u32 %s237_s15, 4  ;;  %s234_s17 = scalar_lea.sflag [#allocation3], %s233_s12  ;;  %s2399_s16 = int_to_ptr.vmem [resolvable:$true] %s245_s16 }
  0x48   : > { %s2117_s18 = scalar_lea.hbm %s2397_s14, 128  ;;  %p2119_p0 = pneg %p2401_p11 }
  0x49   : > { %p2118_p12 = scmp.ne.s32.totalorder %s2397_s14, %s2117_s18  ;;  %s2122_s13 = scalar_lea.hbm %s3069_s0, 256 }
  0x4a   : > { %p2123_p13 = scmp.lt.u32.totalorder %s2397_s14, %s3069_s0  ;;  %p2124_p6 = scmp.lt.u32.totalorder %s2122_s13, %s2117_s18 }
  0x4b   : > { %p2120_p2 = pnand %p2119_p0, %p2118_p12  ;;  %p2126_p3 = scmp.lt.u32.totalorder %s2117_s18, %s2397_s14 }
  0x4c   : > { %p2125_p10 = por %p2124_p6, %p2123_p13 }
  0x4d   : > { %p2121_p1 = pneg %p2120_p2 }
  0x4e   : > { %p2127_p7 = por %p2126_p3, %p2125_p10 }
  0x50   : > { %p2128_p9 = pnand %p2127_p7, %p2121_p1 }
  0x52   : > { %2131 = shalt.err (!%p2128_p9)
}
  0x53   : > { %s2132_s12 = scalar_lea.vmem %s2399_s16, 128  ;;  %s2223_s20 = smov [#allocation2]  }
  0x54   : > { %p2133_p12 = scmp.ne.s32.totalorder %s2399_s16, %s2132_s12  ;;  %s2137_s15 = sshll.u32 %s2223_s20, 4  ;;  %s2138_s15 = int_to_ptr.vmem [resolvable:$false] %s2137_s15 }
  0x55   : > { %s2139_s8 = scalar_lea.vmem %s2138_s15, 256  ;;  %p2140_p4 = scmp.lt.s32.totalorder %s2399_s16, %s2138_s15 }
  0x56   : > { %p2135_p2 = pnand %p2133_p12, %p2119_p0  ;;  %p2141_p13 = scmp.lt.s32.totalorder %s2139_s8, %s2132_s12 }
  0x58   : > { %p2136_p5 = pneg %p2135_p2  ;;  %p2142_p6 = por %p2141_p13, %p2140_p4 }
  0x5a   : > { %p2143_p10 = pnand %p2142_p6, %p2136_p5 }
  0x5c   : > { %2146 = shalt.err (!%p2143_p10)
}
  0x5d   : > { %1944 = dma.hbm_to_vmem [thread:$0]  (!%p2401_p11), %s2397_s14, 128, %s2399_s16, %s234_s17  }
  0x5e   : > { %254 = sbr.rel (%p2304_p8) target bundleno = 972 (0x3cc), region = 44 }
  0x65   : > { %s2433_s18 = sand.u32 1, %s2209_s22   ;;  %p3090_p4 = scmp.ne.s32.totalorder %s3083_s27, 0 }
  0x66   : > { %s1784_s30 = sshll.u32 %s2433_s18, 3  ;;  %s257_s13 = scalar_lea.sflag [#allocation3], %s2433_s18 }
  0x67   : > { %s260_s10 = scalar_lea.vmem [#allocation2], %s1784_s30 }
  0x68   : > { %2192 = dma.done.wait (%p3090_p4), %s257_s13, 128  }
  0x69   : > { %2194 = vsyncadd (%p3090_p4), %s257_s13, 4294967168  ;;  %p3091_p5 = scmp.eq.s32.totalorder %s2285_s25, 0 }
  0x6b   : > { %2196 = dma.done.wait (%p3091_p5), [#allocation6], 2048   ;;  %p3092_p8 = pmov %p3091_p5 }
  0x6c   : > { %v298_v0 = vld [vmem:[%s260_s10] sm:$0xff]  ;;  %v1997_v2 = vld [vmem:[#allocation5] sm:$0xff]   ;;  %v1998_v3 = vld [vmem:[#allocation5 + $0x8] sm:$0xff]   ;;  %s2224_s29 = smov 64   ;;  %s2225_s14 = smov 32   ;;  %v346_v19 = vlaneseq  ;;  %vm308_vm0 = vcmask 785408  }
  0x6d   : > { %2198 = vsyncadd (%p3092_p8), [#allocation6], 4294965248  ;;  %v1788_v1 = vcombine.low %v298_v0, %v298_v0  ;;  %v1789_v4 = vcombine.high %v298_v0, %v298_v0  ;;  %1874 = vmatprep.subr.bf16.mxu0 %v1997_v2  ;;  %v1999_v5 = vld [vmem:[#allocation5 + $0x10] sm:$0xff]   ;;  %s2226_s27 = smov 96   ;;  %v2000_v6 = vld [vmem:[#allocation5 + $0x18] sm:$0xff]   ;;  %v311_v23 = vsel %vm308_vm0, %v298_v0, 0 }
  0x6e   : > { %1875 = vmatpush3.bf16.msra.mxu0 %v1997_v2  ;;  %v2001_v7 = vld [vmem:[#allocation5 + $0x20] sm:$0xff]   ;;  %v2002_v8 = vld [vmem:[#allocation5 + $0x28] sm:$0xff]   ;;  %v2003_v9 = vld [vmem:[#allocation5 + $0x30] sm:$0xff]   ;;  %v2227_v17 = vmov 1966171168   ;;  %v347_v21 = vshrl.u32 %v346_v19, 7 }
  0x6f   : > { %318 = vrot.lane.b32.xlu1 %v1788_v1, %s2224_s29  ;;  %302 = vrot.lane.b32.xlu0 %v1788_v1, %s2225_s14  ;;  %v2004_v10 = vld [vmem:[#allocation5 + $0x38] sm:$0xff]   ;;  %v2005_v11 = vld [vmem:[#allocation7] sm:$0xff]   ;;  %v2006_v12 = vld [vmem:[#allocation7 + $0x8] sm:$0xff]   ;;  %v344_v18 = vunpack.c.l.s4 %v2227_v17  ;;  %v333_v25 = vsel %vm308_vm0, %v1789_v4, 0  ;;  %vm304_vm1 = vcmask 261120   ;;  %vm322_vm2 = vcmask 523264  }
  0x70   : > { %1876 = vmatprep.subr.bf16.mxu0 %v1998_v3  ;;  %1898 = vmatprep.subr.bf16.mxu1 %v2005_v11  ;;  %v2007_v13 = vld [vmem:[#allocation7 + $0x10] sm:$0xff]   ;;  %v2008_v14 = vld [vmem:[#allocation7 + $0x18] sm:$0xff]   ;;  %v2009_v15 = vld [vmem:[#allocation7 + $0x20] sm:$0xff]   ;;  %v2457_v38 = vsub.s32 0, %v347_v21  ;;  %vm966_vm3 = vcmask 1040384   ;;  %vm1010_vm5 = vcmask 1041408  }
  0x71   : > { %1899 = vmatpush3.bf16.msra.mxu1 %v2005_v11  ;;  %v2010_v16 = vld [vmem:[#allocation7 + $0x28] sm:$0xff]   ;;  %v345_v20 = vunpack.c.0.s8 %v344_v18  ;;  %vm967_vm4 = vsmask.f32 256  ;;  %vm1011_vm6 = vsmask.f32 1280  ;;  %vm1054_vm7 = vcmask 1042432  }
  0x72   : > { %1877 = vmatpush3.bf16.msra.mxu0 %v1998_v3  ;;  %1900 = vmatprep.subr.bf16.mxu1 %v2006_v12  ;;  %vm1055_vm8 = vsmask.f32 2304  ;;  %vm1098_vm9 = vcmask 1043456   ;;  %vm1099_vm10 = vsmask.f32 3328  ;;  %vm2671_vm11 = vmand %vm966_vm3, %vm967_vm4  ;;  %vm1656_vm15 = vcmask 1041409  }
  0x73   : > { %320 = vrot.lane.b32.xlu1 %v1789_v4, %s2224_s29  ;;  %312 = vrot.lane.b32.xlu0 %v1788_v1, %s2226_s27  ;;  %v2447_v22 = vsub.s32 %v345_v20, %v347_v21  ;;  %vm2687_vm12 = vmand %vm1010_vm5, %vm1011_vm6  ;;  %vm1666_vm4 = vcmask 1046534   ;;  %s1846_s15 = sshll.u32 %s2285_s25, 7  ;;  %s296_s8 = scalar_lea.vmem [#allocation8], %s1784_s30 }
  0x74   : > { %1878 = vmatprep.subr.bf16.mxu0 %v1999_v5  ;;  %vm2714_vm13 = vmand %vm1054_vm7, %vm1055_vm8  ;;  %s1686_s13 = sshll.u32 %s296_s8, 4  ;;  %p3139_p0 = scmp.ne.s32.totalorder %s3088_s9, 0  ;;  %s3027_s13 = int_to_ptr.vmem [resolvable:$true] %s1686_s13 }
  0x75   : > { %1901 = vmatpush3.bf16.msra.mxu1 %v2006_v12  ;;  %v382_v24 = vrot.slane %v311_v23, %v2447_v22  ;;  %v514_v27 = vrot.slane %v333_v25, %v2447_v22  ;;  %vm2733_vm14 = vmand %vm1098_vm9, %vm1099_vm10  ;;  %s2147_s25 = scalar_lea.vmem %s3027_s13, 128  ;;  %s2228_s30 = smov [#allocation8]  }
  0x76   : > { %1879 = vmatpush3.bf16.msra.mxu0 %v1999_v5  ;;  %1902 = vmatprep.subr.bf16.mxu1 %v2007_v13  ;;  %p2148_p11 = scmp.ne.s32.totalorder %s3027_s13, %s2147_s25  ;;  %s2151_s16 = sshll.u32 %s2228_s30, 4  ;;  %s2152_s16 = int_to_ptr.vmem [resolvable:$false] %s2151_s16 }
  0x77   : > { %326 = vrot.lane.b32.xlu0 %v1789_v4, %s2225_s14  ;;  %334 = vrot.lane.b32.xlu1 %v1789_v4, %s2226_s27  ;;  %v383_v26 = vcombine.high %v382_v24, %v382_v24  ;;  %v390_v28 = vrot.slane %v382_v24, %v2447_v22  ;;  %v515_v30 = vcombine.high %v514_v27, %v514_v27  ;;  %s3025_s14 = scalar_lea.hbm %s3075_s6, %s1846_s15  ;;  %s1673_s27 = scalar_lea.sflag [#allocation4], %s2433_s18 }
  0x78   : > { %1880 = vmatprep.subr.bf16.mxu0 %v2000_v6  ;;  %v522_v32 = vrot.slane %v514_v27, %v2447_v22  ;;  %p2149_p1 = pnand %p2148_p11, %p3139_p0  ;;  %s2153_s7 = scalar_lea.vmem %s2152_s16, 256 }
  0x79   : > { %1903 = vmatpush3.bf16.msra.mxu1 %v2007_v13  ;;  %v397_v29 = vrot.slane %v383_v26, %v2447_v22  ;;  %v398_v31 = vcombine.high %v390_v28, %v390_v28  ;;  %v401_v34 = vunpack.i.h.s16 %v390_v28  ;;  %v529_v35 = vrot.slane %v515_v30, %v2447_v22  ;;  %p2154_p7 = scmp.lt.s32.totalorder %s3027_s13, %s2152_s16  ;;  %p2155_p9 = scmp.lt.s32.totalorder %s2153_s7, %s2147_s25 }
  0x7a   : > { %1881 = vmatpush3.bf16.msra.mxu0 %v2000_v6  ;;  %1904 = vmatprep.subr.bf16.mxu1 %v2008_v14  ;;  %v1794_v39 = vpack.i.b16 %v390_v28, %v390_v28  ;;  %v530_v40 = vcombine.high %v522_v32, %v522_v32  ;;  %v533_v44 = vunpack.i.h.s16 %v522_v32  ;;  %v1810_v55 = vpack.i.b16 %v522_v32, %v522_v32  ;;  %p2150_p3 = pneg %p2149_p1 }
  0x7b   : > { %1882 = vmatprep.subr.bf16.mxu0 %v2001_v7  ;;  %v399_v33 = vcombine.high %v397_v29, %v397_v29  ;;  %v403_v36 = vunpack.i.h.s16 %v397_v29  ;;  %v405_v37 = vunpack.i.h.s16 %v398_v31  ;;  %v2459_v42 = vpack.i.b16 %v401_v34, %v401_v34  ;;  %p2156_p12 = por %p2155_p9, %p2154_p7 }
  0x7c   : > { %v1795_v43 = vpack.i.b16 %v397_v29, %v397_v29  ;;  %v535_v45 = vunpack.i.h.s16 %v529_v35  ;;  %v1796_v47 = vpack.i.b16 %v398_v31, %v398_v31  ;;  %v2466_v49 = vrot.slane %v1794_v39, %v2457_v38 }
  0x7d   : > { %1905 = vmatpush3.bf16.msra.mxu1 %v2008_v14  ;;  %v407_v41 = vunpack.i.h.s16 %v399_v33  ;;  %v2461_v46 = vpack.i.b16 %v403_v36, %v403_v36  ;;  %v2463_v48 = vpack.i.b16 %v405_v37, %v405_v37  ;;  %v537_v50 = vunpack.i.h.s16 %v530_v40  ;;  %p2157_p2 = pnand %p2156_p12, %p2150_p3 }
  0x7e   : > { %1883 = vmatpush3.bf16.msra.mxu0 %v2001_v7  ;;  %1906 = vmatprep.subr.bf16.mxu1 %v2009_v15  ;;  %v531_v51 = vcombine.high %v529_v35, %v529_v35  ;;  %v1797_v52 = vpack.i.b16 %v399_v33, %v399_v33  ;;  %v2473_v56 = vrot.slane %v1795_v43, %v2457_v38 }
  0x7f   : > { %1884 = vmatprep.subr.bf16.mxu0 %v2002_v8  ;;  %v2468_v53 = vpack.i.b16 %v407_v41, %v407_v41  ;;  %v2477_v59 = vpack.i.b16 %v533_v44, %v533_v44  ;;  %v1811_v60 = vpack.i.b16 %v529_v35, %v529_v35  ;;  %v2479_v61 = vpack.i.b16 %v535_v45, %v535_v45 }
  0x80   : > { %v2484_v63 = vrot.slane %v1796_v47, %v2457_v38  ;;  %v1812_v3 = vpack.i.b16 %v530_v40, %v530_v40  ;;  %v2491_v4 = vpack.i.b16 %v537_v50, %v537_v50  ;;  %v539_v5 = vunpack.i.h.s16 %v531_v51 }
  0x81   : > { %1907 = vmatpush3.bf16.msra.mxu1 %v2009_v15  ;;  %v2494_v6 = vrot.slane %v1797_v52, %v2457_v38  ;;  %v2505_v12 = vrot.slane %v1811_v60, %v2457_v38  ;;  %v1813_v14 = vpack.i.b16 %v531_v51, %v531_v51 }
  0x82   : > { %1885 = vmatpush3.bf16.msra.mxu0 %v2002_v8  ;;  %1908 = vmatprep.subr.bf16.mxu1 %v2010_v16  ;;  %v2514_v21 = vrot.slane %v1812_v3, %v2457_v38  ;;  %v2518_v24 = vpack.i.b16 %v539_v5, %v539_v5 }
  0x83   : > { %1886 = vmatprep.subr.bf16.mxu0 %v2003_v9  ;;  %v2525_v32 = vrot.slane %v1813_v14, %v2457_v38 }
  0x84   : > { %3093 = vst [vmem:[#allocation12_spill] sm:$0xff] %v2518_v24 }
  0x85   : > { %1909 = vmatpush3.bf16.msra.mxu1 %v2010_v16  ;;  %3094 = vst [vmem:[#allocation13_spill] sm:$0xff] %v2525_v32 }
  0x86   : > { %1887 = vmatpush3.bf16.msra.mxu0 %v2003_v9  ;;  %v2500_v9 = vrot.slane %v1810_v55, %v2457_v38 }
  0x87   : > { %1888 = vmatprep.subr.bf16.mxu0 %v2004_v10 }
  0x8a   : > { %1889 = vmatpush3.bf16.msra.mxu0 %v2004_v10 }
  0xe1   : > { %v319_v57 = vpop.permute.xlu1 %318  ;;  %v2475_v58 = vpop.permute.xlu0 %302 }
  0xe2   : > { %v307_v1 = vsel %vm304_vm1, 0, %v2475_v58 }
  0xe3   : > { %v309_v2 = vsel %vm308_vm0, %v307_v1, 0 }
  0xe4   : > { %v349_v8 = vrot.slane %v309_v2, %v2447_v22 }
  0xe5   : > { %v321_v10 = vpop.permute.xlu1 %320  ;;  %v313_v19 = vpop.permute.xlu0 %312 }
  0xe6   : > { %v350_v15 = vcombine.high %v349_v8, %v349_v8  ;;  %v357_v16 = vrot.slane %v349_v8, %v2447_v22  ;;  %v323_v17 = vsel %vm322_vm2, %v319_v57, %v321_v10  ;;  %v340_v18 = vsel %vm322_vm2, %v321_v10, 0 }
  0xe7   : > { %v325_v20 = vsel %vm308_vm0, %v323_v17, 0  ;;  %v341_v28 = vsel %vm308_vm0, %v340_v18, 0  ;;  %v315_v31 = vsel %vm308_vm0, %v313_v19, 0  ;;  %vm1662_vm2 = vcmask 1044484  }
  0xe8   : > { %v364_v25 = vrot.slane %v350_v15, %v2447_v22  ;;  %v365_v26 = vcombine.high %v357_v16, %v357_v16  ;;  %v368_v27 = vunpack.i.h.s16 %v357_v16  ;;  %v1790_v29 = vpack.i.b16 %v357_v16, %v357_v16 }
  0xe9   : > { %v448_v30 = vrot.slane %v325_v20, %v2447_v22  ;;  %v580_v41 = vrot.slane %v341_v28, %v2447_v22  ;;  %v415_v55 = vrot.slane %v315_v31, %v2447_v22 }
  0xea   : > { %v366_v33 = vcombine.high %v364_v25, %v364_v25  ;;  %v370_v34 = vunpack.i.h.s16 %v364_v25  ;;  %v372_v35 = vunpack.i.h.s16 %v365_v26  ;;  %v2527_v36 = vpack.i.b16 %v368_v27, %v368_v27 }
  0xeb   : > { %v1791_v37 = vpack.i.b16 %v364_v25, %v364_v25  ;;  %v1792_v39 = vpack.i.b16 %v365_v26, %v365_v26  ;;  %v449_v40 = vcombine.high %v448_v30, %v448_v30  ;;  %v2537_v51 = vrot.slane %v1790_v29, %v2457_v38 }
  0xec   : > { %v374_v43 = vunpack.i.h.s16 %v366_v33  ;;  %v2530_v44 = vpack.i.b16 %v370_v34, %v370_v34  ;;  %v2532_v45 = vpack.i.b16 %v372_v35, %v372_v35  ;;  %v1793_v50 = vpack.i.b16 %v366_v33, %v366_v33  ;;  %v327_v35 = vpop.permute.xlu0 %326 }
  0xed   : > { %v456_v52 = vrot.slane %v448_v30, %v2447_v22  ;;  %v2546_v1 = vrot.slane %v1791_v37, %v2457_v38  ;;  %v2549_v2 = vrot.slane %v1792_v39, %v2457_v38  ;;  %v463_v3 = vrot.slane %v449_v40, %v2447_v22 }
  0xee   : > { %v2541_v57 = vpack.i.b16 %v374_v43, %v374_v43  ;;  %v581_v10 = vcombine.high %v580_v41, %v580_v41  ;;  %v2557_v16 = vrot.slane %v580_v41, %v2447_v22  ;;  %v2563_v26 = vrot.slane %v1793_v50, %v2457_v38  ;;  %v335_v43 = vpop.permute.xlu1 %334 }
  0xef   : > { %v464_v5 = vcombine.high %v456_v52, %v456_v52  ;;  %v467_v8 = vunpack.i.h.s16 %v456_v52  ;;  %v1802_v17 = vpack.i.b16 %v456_v52, %v456_v52  ;;  %v465_v18 = vcombine.high %v463_v3, %v463_v3 }
  0xf0   : > { %3095 = vst [vmem:[#allocation14_spill] sm:$0xff] %v2541_v57  ;;  %v469_v19 = vunpack.i.h.s16 %v463_v3  ;;  %v2560_v25 = vrot.slane %v581_v10, %v2447_v22  ;;  %v1803_v28 = vpack.i.b16 %v463_v3, %v463_v3  ;;  %v416_v29 = vcombine.high %v415_v55, %v415_v55 }
  0xf1   : > { %v471_v20 = vunpack.i.h.s16 %v464_v5  ;;  %v2565_v27 = vpack.i.b16 %v467_v8, %v467_v8  ;;  %v473_v30 = vunpack.i.h.s16 %v465_v18  ;;  %v1804_v33 = vpack.i.b16 %v464_v5, %v464_v5 }
  0xf2   : > { %v2567_v31 = vpack.i.b16 %v469_v19, %v469_v19  ;;  %v2575_v39 = vcombine.high %v2557_v16, %v2557_v16  ;;  %v2579_v40 = vcombine.high %v2560_v25, %v2560_v25  ;;  %v1805_v41 = vpack.i.b16 %v465_v18, %v465_v18 }
  0xf3   : > { %v2569_v34 = vpack.i.b16 %v471_v20, %v471_v20  ;;  %v2581_v50 = vpack.i.b16 %v473_v30, %v473_v30  ;;  %v2584_v52 = vrot.slane %v1802_v17, %v2457_v38  ;;  %v2589_v5 = vrot.slane %v1803_v28, %v2457_v38 }
  0xf4   : > { %v423_v10 = vrot.slane %v415_v55, %v2447_v22  ;;  %v430_v19 = vrot.slane %v416_v29, %v2447_v22  ;;  %v329_v18 = vsel %vm304_vm1, %v2475_v58, %v327_v35  ;;  %v2598_v20 = vrot.slane %v1804_v33, %v2457_v38 }
  0xf5   : > { %3096 = vst [vmem:[#allocation15_spill] sm:$0xff] %v2581_v50  ;;  %v331_v30 = vsel %vm308_vm0, %v329_v18, 0  ;;  %v337_v28 = vsel %vm308_vm0, %v335_v43, 0  ;;  %v2611_v18 = vrot.slane %v1805_v41, %v2457_v38  ;;  %vm1658_vm0 = vcmask 1042434  }
  0xf6   : > { %v431_v47 = vcombine.high %v423_v10, %v423_v10  ;;  %v432_v37 = vcombine.high %v430_v19, %v430_v19  ;;  %v434_v7 = vunpack.i.h.s16 %v423_v10  ;;  %v436_v23 = vunpack.i.h.s16 %v430_v19 }
  0xf7   : > { %v1798_v55 = vpack.i.b16 %v423_v10, %v423_v10  ;;  %v1799_v15 = vpack.i.b16 %v430_v19, %v430_v19  ;;  %v481_v29 = vrot.slane %v331_v30, %v2447_v22  ;;  %v547_v58 = vrot.slane %v337_v28, %v2447_v22  ;;  %3097 = vst [vmem:[#allocation16_spill] sm:$0xff] %v2611_v18 }
  0xf8   : > { %v438_v35 = vunpack.i.h.s16 %v431_v47  ;;  %v440_v33 = vunpack.i.h.s16 %v432_v37  ;;  %v2606_v0 = vpack.i.b16 %v434_v7, %v434_v7  ;;  %v2608_v13 = vpack.i.b16 %v436_v23, %v436_v23 }
  0xf9   : > { %v1800_v17 = vpack.i.b16 %v431_v47, %v431_v47  ;;  %v1801_v8 = vpack.i.b16 %v432_v37, %v432_v37  ;;  %v2620_v30 = vrot.slane %v1798_v55, %v2457_v38  ;;  %v599_v7 = vunpack.i.h.s16 %v2557_v16 }
  0xfa   : > { %v2615_v10 = vpack.i.b16 %v438_v35, %v438_v35  ;;  %v2617_v19 = vpack.i.b16 %v440_v33, %v440_v33  ;;  %v2626_v41 = vrot.slane %v1799_v15, %v2457_v38  ;;  %v482_v28 = vcombine.high %v481_v29, %v481_v29 }
  0xfb   : > { %v489_v47 = vrot.slane %v481_v29, %v2447_v22  ;;  %v2632_v35 = vrot.slane %v1800_v17, %v2457_v38  ;;  %v548_v55 = vcombine.high %v547_v58, %v547_v58  ;;  %v555_v33 = vrot.slane %v547_v58, %v2447_v22 }
  0xfc   : > { %3098 = vst [vmem:[#allocation17_spill] sm:$0xff] %v2617_v19  ;;  %v2638_v15 = vrot.slane %v1801_v8, %v2457_v38  ;;  %v496_v14 = vrot.slane %v482_v28, %v2447_v22  ;;  %v3106_v57 = vrot.slane %v2606_v0, %v2457_v38  ;;  %v3109_v0 = vrot.slane %v2565_v27, %v2457_v38 }
  0xfd   : > { %v497_v29 = vcombine.high %v489_v47, %v489_v47  ;;  %v500_v62 = vunpack.i.h.s16 %v489_v47  ;;  %v562_v17 = vrot.slane %v548_v55, %v2447_v22  ;;  %v2644_v11 = vcombine.high %v555_v33, %v555_v33 }
  0xfe   : > { %3099 = vst [vmem:[#allocation18_spill] sm:$0xff] %v2638_v15  ;;  %v2646_v58 = vcombine.high %v496_v14, %v496_v14  ;;  %v502_v3 = vunpack.i.h.s16 %v496_v14  ;;  %v1806_v23 = vpack.i.b16 %v489_v47, %v489_v47  ;;  %v1807_v8 = vpack.i.b16 %v496_v14, %v496_v14 }
  0xff   : > { %v504_v43 = vunpack.i.h.s16 %v497_v29  ;;  %v1808_v28 = vpack.i.b16 %v497_v29, %v497_v29  ;;  %v2648_v60 = vcombine.high %v562_v17, %v562_v17  ;;  %v566_v54 = vunpack.i.h.s16 %v555_v33 }
 0x100   : > { %v506_v24 = vunpack.i.h.s16 %v2646_v58  ;;  %v2651_v37 = vpack.i.b16 %v502_v3, %v502_v3  ;;  %v568_v22 = vunpack.i.h.s16 %v562_v17  ;;  %v791_v55 = vpack.i.b16 %v500_v62, %v500_v62 }
 0x101   : > { %v2653_v32 = vpack.i.b16 %v504_v43, %v504_v43  ;;  %v570_v47 = vunpack.i.h.s16 %v2644_v11  ;;  %v1814_v18 = vpack.i.b16 %v555_v33, %v555_v33  ;;  %v809_v14 = vrot.slane %v1807_v8, %v2457_v38 }
 0x102   : > { %v2658_v19 = vpack.i.b16 %v506_v24, %v506_v24  ;;  %v2662_v29 = vrot.slane %v1808_v28, %v2457_v38  ;;  %v813_v43 = vrot.slane %v2651_v37, %v2457_v38  ;;  %v879_v15 = vpack.i.b16 %v566_v54, %v566_v54 }
 0x103   : > { %v1815_v50 = vpack.i.b16 %v562_v17, %v562_v17  ;;  %v881_v33 = vpack.i.b16 %v568_v22, %v568_v22  ;;  %v1816_v8 = vpack.i.b16 %v2644_v11, %v2644_v11  ;;  %v2677_v28 = vpack.i.b16 %v570_v47, %v570_v47 }
 0x104   : > { %v801_v3 = vrot.slane %v1806_v23, %v2457_v38  ;;  %v805_v54 = vrot.slane %v791_v55, %v2457_v38  ;;  %v1818_v17 = vpack.i.b16 %v2557_v16, %v2557_v16  ;;  %v919_v62 = vpack.i.b16 %v599_v7, %v599_v7 }
 0x105   : > { %v889_v11 = vrot.slane %v1814_v18, %v2457_v38  ;;  %v969_v47 = vsel %vm2671_vm11, %v2537_v51, %v2466_v49  ;;  %v3104_v23 = vrot.slane %v2459_v42, %v2457_v38  ;;  %v3105_v16 = vrot.slane %v2527_v36, %v2457_v38 }
 0x106   : > { %v601_v55 = vunpack.i.h.s16 %v2560_v25  ;;  %v893_v37 = vrot.slane %v879_v15, %v2457_v38  ;;  %v980_v18 = vsel %vm966_vm3, %v969_v47, %v2620_v30  ;;  %v897_v36 = vrot.slane %v1815_v50, %v2457_v38 }
 0x107   : > { %v970_v7 = vsel %vm2671_vm11, %v3105_v16, %v3104_v23  ;;  %v929_v51 = vrot.slane %v1818_v17, %v2457_v38  ;;  %v933_v15 = vrot.slane %v919_v62, %v2457_v38  ;;  %v1013_v30 = vsel %vm2687_vm12, %v980_v18, %v2584_v52 }
 0x108   : > { %v984_v49 = vsel %vm966_vm3, %v970_v7, %v3106_v57  ;;  %v1024_v47 = vsel %vm1010_vm5, %v1013_v30, %v801_v3  ;;  %v901_v62 = vrot.slane %v881_v33, %v2457_v38  ;;  %v1819_v52 = vpack.i.b16 %v2560_v25, %v2560_v25 }
 0x109   : > { %v1014_v57 = vsel %vm2687_vm12, %v984_v49, %v3109_v0  ;;  %v1057_v27 = vsel %vm2714_vm13, %v1024_v47, %v2500_v9  ;;  %v3112_v3 = vrot.slane %v2477_v59, %v2457_v38  ;;  %v921_v17 = vpack.i.b16 %v601_v55, %v601_v55 }
 0x10a   : > { %v1028_v23 = vsel %vm1010_vm5, %v1014_v57, %v805_v54  ;;  %v971_v16 = vsel %vm2671_vm11, %v2546_v1, %v2473_v56  ;;  %v1068_v33 = vsel %vm1054_vm7, %v1057_v27, %v889_v11  ;;  %v3113_v7 = vrot.slane %v2461_v46, %v2457_v38 }
 0x10b   : > { %v1058_v54 = vsel %vm2714_vm13, %v1028_v23, %v3112_v3  ;;  %v3114_v9 = vrot.slane %v2530_v44, %v2457_v38  ;;  %v988_v55 = vsel %vm966_vm3, %v971_v16, %v2626_v41  ;;  %v1101_v18 = vsel %vm2733_vm14, %v1068_v33, %v929_v51 }
 0x10c   : > { %v1072_v25 = vsel %vm1054_vm7, %v1058_v54, %v893_v37  ;;  %v3115_v1 = vrot.slane %v2608_v13, %v2457_v38  ;;  %v1015_v44 = vsel %vm2687_vm12, %v988_v55, %v2589_v5  ;;  %v3116_v11 = vrot.slane %v2567_v31, %v2457_v38 }
 0x10d   : > { %v972_v59 = vsel %vm2671_vm11, %v3114_v9, %v3113_v7  ;;  %v1102_v56 = vsel %vm2733_vm14, %v1072_v25, %v933_v15  ;;  %v1032_v49 = vsel %vm1010_vm5, %v1015_v44, %v809_v14  ;;  %v603_v51 = vunpack.i.h.s16 %v2575_v39  ;;  %v3128_v44 = vld [vmem:[#allocation14_spill] sm:$0xff] }
 0x10e   : > { %v992_v46 = vsel %vm966_vm3, %v972_v59, %v3115_v1  ;;  %v1823_v37 = vcombine.low %v1101_v18, %v1102_v56  ;;  %v937_v15 = vrot.slane %v1819_v52, %v2457_v38  ;;  %v941_v13 = vrot.slane %v921_v17, %v2457_v38 }
 0x10f   : > { %v1016_v41 = vsel %vm2687_vm12, %v992_v46, %v3116_v11  ;;  %v1059_v5 = vsel %vm2714_vm13, %v1032_v49, %v2505_v12  ;;  %v3117_v31 = vrot.slane %v2479_v61, %v2457_v38  ;;  %v905_v57 = vrot.slane %v1816_v8, %v2457_v38  ;;  %v3130_v11 = vld [vmem:[#allocation18_spill] sm:$0xff] }
 0x110   : > { %v1036_v30 = vsel %vm1010_vm5, %v1016_v41, %v813_v43  ;;  %1890 = vmatprep.mubr.bf16.mxu0 %v1823_v37  ;;  %v1076_v14 = vsel %vm1054_vm7, %v1059_v5, %v897_v36  ;;  %v1820_v47 = vpack.i.b16 %v2575_v39, %v2575_v39  ;;  %v909_v23 = vrot.slane %v2677_v28, %v2457_v38 }
 0x111   : > { %v1060_v0 = vsel %vm2714_vm13, %v1036_v30, %v3117_v31  ;;  %v923_v12 = vpack.i.b16 %v603_v51, %v603_v51  ;;  %v973_v61 = vsel %vm2671_vm11, %v2549_v2, %v2484_v63  ;;  %v1103_v52 = vsel %vm2733_vm14, %v1076_v14, %v937_v15  ;;  %v3134_v30 = vld [vmem:[#allocation15_spill] sm:$0xff]  ;;  %v3136_v14 = vld [vmem:[#allocation13_spill] sm:$0xff] }
 0x112   : > { %v1080_v43 = vsel %vm1054_vm7, %v1060_v0, %v901_v62  ;;  %v3118_v39 = vrot.slane %v2463_v48, %v2457_v38  ;;  %v3119_v36 = vrot.slane %v2532_v45, %v2457_v38  ;;  %v996_v62 = vsel %vm966_vm3, %v973_v61, %v2632_v35 }
 0x113   : > { %v1104_v8 = vsel %vm2733_vm14, %v1080_v43, %v941_v13  ;;  %v3120_v63 = vrot.slane %v2615_v10, %v2457_v38  ;;  %v1017_v3 = vsel %vm2687_vm12, %v996_v62, %v2598_v20  ;;  %v605_v48 = vunpack.i.h.s16 %v2579_v40  ;;  %v3133_v13 = vld [vmem:[#allocation16_spill] sm:$0xff]  ;;  %v2012_v62 = vld [vmem:[#allocation7 + $0x38] sm:$0xff]  }
 0x114   : > { %v974_v28 = vsel %vm2671_vm11, %v3119_v36, %v3118_v39  ;;  %v1824_v27 = vcombine.low %v1103_v52, %v1104_v8  ;;  %v3121_v45 = vunpack.i.h.s16 %v2648_v60  ;;  %v945_v17 = vrot.slane %v1820_v47, %v2457_v38 }
 0x115   : > { %v1000_v2 = vsel %vm966_vm3, %v974_v28, %v3120_v63  ;;  %v3122_v35 = vrot.slane %v2569_v34, %v2457_v38  ;;  %v1040_v16 = vsel %vm1010_vm5, %v1017_v3, %v2662_v29  ;;  %v949_v20 = vrot.slane %v923_v12, %v2457_v38  ;;  %v2011_v28 = vld [vmem:[#allocation7 + $0x30] sm:$0xff]  }
 0x116   : > { %v885_v54 = vpack.i.b16 %v3121_v45, %v3121_v45  ;;  %1891 = vmatmul.mubr.bf16.vlgmr.msra.gmra.mrb[0].mxu0 %v1824_v27  ;;  %v3123_v33 = vrot.slane %v2653_v32, %v2457_v38  ;;  %v1061_v7 = vsel %vm2714_vm13, %v1040_v16, %v2514_v21  ;;  %v3124_v34 = vpack.i.b16 %v2646_v58, %v2646_v58 }
 0x117   : > { %v1018_v10 = vsel %vm2687_vm12, %v1000_v2, %v3122_v35  ;;  %v3125_v29 = vrot.slane %v2491_v4, %v2457_v38  ;;  %v1084_v55 = vsel %vm1054_vm7, %v1061_v7, %v905_v57  ;;  %v829_v32 = vrot.slane %v2658_v19, %v2457_v38  ;;  %1910 = vmatprep.subr.bf16.mxu1 %v2011_v28 }
 0x118   : > { %v1044_v25 = vsel %vm1010_vm5, %v1018_v10, %v3123_v33  ;;  %v825_v9 = vrot.slane %v3124_v34, %v2457_v38  ;;  %v3126_v21 = vpack.i.b16 %v2648_v60, %v2648_v60  ;;  %v1821_v58 = vpack.i.b16 %v2579_v40, %v2579_v40  ;;  %1911 = vmatpush3.bf16.msra.mxu1 %v2011_v28 }
 0x119   : > { %v1062_v59 = vsel %vm2714_vm13, %v1044_v25, %v3125_v29  ;;  %v925_v1 = vpack.i.b16 %v605_v48, %v605_v48  ;;  %v975_v4 = vsel %vm2671_vm11, %v2563_v26, %v2494_v6  ;;  %v1105_v46 = vsel %vm2733_vm14, %v1084_v55, %v945_v17  ;;  %v3131_v26 = vld [vmem:[#allocation17_spill] sm:$0xff]  ;;  %1912 = vmatprep.subr.bf16.mxu1 %v2012_v62 }
 0x11a   : > { %v913_v18 = vrot.slane %v3126_v21, %v2457_v38  ;;  %v1088_v56 = vsel %vm1054_vm7, %v1062_v59, %v909_v23  ;;  %v3127_v60 = vrot.slane %v2468_v53, %v2457_v38  ;;  %v3129_v37 = vrot.slane %v3128_v44, %v2457_v38  ;;  %v3137_v23 = vld [vmem:[#allocation12_spill] sm:$0xff] }
 0x11b   : > { %v1106_v19 = vsel %vm2733_vm14, %v1088_v56, %v949_v20  ;;  %v1004_v41 = vsel %vm966_vm3, %v975_v4, %v3130_v11  ;;  %v917_v6 = vrot.slane %v885_v54, %v2457_v38  ;;  %v3132_v51 = vrot.slane %v3131_v26, %v2457_v38  ;;  %v1835_v4 = vld [vmem:[%s3073_s4] ss:$0 sm:$0xff] }
 0x11c   : > { %v976_v40 = vsel %vm2671_vm11, %v3129_v37, %v3127_v60  ;;  %v1825_v49 = vcombine.low %v1105_v46, %v1106_v19  ;;  %v1019_v53 = vsel %vm2687_vm12, %v1004_v41, %v3133_v13  ;;  %v3135_v5 = vrot.slane %v3134_v30, %v2457_v38  ;;  %1913 = vmatpush3.bf16.msra.mxu1 %v2012_v62 }
 0x11d   : > { %v1008_v15 = vsel %vm966_vm3, %v976_v40, %v3132_v51  ;;  %v1048_v31 = vsel %vm1010_vm5, %v1019_v53, %v825_v9  ;;  %v953_v47 = vrot.slane %v1821_v58, %v2457_v38  ;;  %v957_v43 = vrot.slane %v925_v1, %v2457_v38 }
 0x11e   : > { %v1020_v24 = vsel %vm2687_vm12, %v1008_v15, %v3135_v5  ;;  %1894 = vmatprep.mubr.bf16.mxu0 %v1825_v49  ;;  %v1063_v57 = vsel %vm2714_vm13, %v1048_v31, %v3136_v14  ;;  %v3138_v12 = vrot.slane %v3137_v23, %v2457_v38  ;;  %v1822_v38 = vld [vmem:[%s3071_s2] ss:$0 sm:$0xff]  ;;  %vm1660_vm1 = vcmask 1043459  }
 0x11f   : > { %v1052_v0 = vsel %vm1010_vm5, %v1020_v24, %v829_v32  ;;  %v1092_v61 = vsel %vm1054_vm7, %v1063_v57, %v913_v18  ;;  %v1844_v49 = vld [vmem:[%s3074_s5] ss:$0 sm:$0xff]  ;;  %vm1664_vm3 = vcmask 1045509   ;;  %vm1668_vm5 = vcmask 1047559  }
 0x120   : > { %v1064_v22 = vsel %vm2714_vm13, %v1052_v0, %v3138_v12  ;;  %v1107_v8 = vsel %vm2733_vm14, %v1092_v61, %v953_v47 }
 0x121   : > { %v1096_v52 = vsel %vm1054_vm7, %v1064_v22, %v917_v6 }
 0x122   : > { %v1108_v39 = vsel %vm2733_vm14, %v1096_v52, %v957_v43 }
 0x123   : > { %v1826_v36 = vcombine.low %v1107_v8, %v1108_v39 }
 0x125   : > { %1895 = vmatmul.mubr.bf16.gmra.mrb[4].mxu0 %v1826_v36 }
 0x1e9   : > { %v1892_v42 = vpop.f32.mrb[0].mxu0 }
 0x1ea   : > { %v1238_v27 = vpop.f32.mrb[1].mxu0  ;;  %v2918_v3 = vadd.f32 %v1892_v42, %v1822_v38 }
 0x1eb   : > { %v2916_v63 = vadd.f32 %v1822_v38, %v1238_v27  ;;  %v1893_v2 = vpop.f32.mrb[2].mxu0 }
 0x1ec   : > { %v2920_v50 = vadd.f32 %v1893_v2, %v1822_v38  ;;  %v1241_v48 = vpop.f32.mrb[3].mxu0  ;;  %v1271_v10 = vmax.f32 %v2918_v3, 0.0 }
 0x1ed   : > { %v2922_v45 = vadd.f32 %v1822_v38, %v1241_v48  ;;  %v1269_v17 = vmax.f32 %v2916_v63, 0.0 }
 0x1ee   : > { %v1272_v54 = vmax.f32 %v2920_v50, 0.0 }
 0x1ef   : > { %v1270_v35 = vmax.f32 %v2922_v45, 0.0 }
 0x1f0   : > { %v1278_v20 = vpack.c.bf16 %v1272_v54, %v1271_v10 }
 0x1f1   : > { %v1277_v16 = vpack.c.bf16 %v1270_v35, %v1269_v17 }
 0x1f3   : > { %1914 = vmatprep.mubr.bf16.mxu1 %v1277_v16 }
 0x1f4   : > { %1915 = vmatmul.mubr.bf16.vlgmr.msra.gmra.mrb[0].mxu1 %v1278_v20 }
 0x1f8   : > { %v1896_v33 = vpop.f32.mrb[4].mxu0 }
 0x1f9   : > { %v1254_v25 = vpop.f32.mrb[5].mxu0  ;;  %v2938_v9 = vadd.f32 %v1896_v33, %v1822_v38 }
 0x1fa   : > { %v2936_v7 = vadd.f32 %v1822_v38, %v1254_v25  ;;  %v1897_v34 = vpop.f32.mrb[6].mxu0 }
 0x1fb   : > { %v2940_v29 = vadd.f32 %v1897_v34, %v1822_v38  ;;  %v1257_v59 = vpop.f32.mrb[7].mxu0  ;;  %v1275_v56 = vmax.f32 %v2938_v9, 0.0 }
 0x1fc   : > { %v2942_v55 = vadd.f32 %v1822_v38, %v1257_v59  ;;  %v1273_v21 = vmax.f32 %v2936_v7, 0.0 }
 0x1fd   : > { %v1276_v32 = vmax.f32 %v2940_v29, 0.0 }
 0x1fe   : > { %v1274_v18 = vmax.f32 %v2942_v55, 0.0 }
 0x1ff   : > { %v1280_v1 = vpack.c.bf16 %v1276_v32, %v1275_v56 }
 0x200   : > { %v1279_v58 = vpack.c.bf16 %v1274_v18, %v1273_v21 }
 0x202   : > { %1918 = vmatprep.mubr.bf16.mxu1 %v1279_v58 }
 0x203   : > { %1919 = vmatmul.mubr.bf16.gmra.mrb[4].mxu1 %v1280_v1 }
 0x2c7   : > { %v1916_v46 = vpop.f32.mrb[0].mxu1 }
 0x2c8   : > { %v1395_v19 = vadd.f32 %v1916_v46, %v1835_v4  ;;  %v1386_v60 = vpop.f32.mrb[1].mxu1 }
 0x2c9   : > { %v1387_v44 = vadd.f32 %v1835_v4, %v1386_v60  ;;  %v1917_v37 = vpop.f32.mrb[2].mxu1 }
 0x2ca   : > { %2013 = vtanh.f32 %v1395_v19  ;;  %v1389_v40 = vpop.f32.mrb[3].mxu1  ;;  %v1398_v41 = vadd.f32 %v1917_v37, %v1835_v4 }
 0x2cb   : > { %v1390_v11 = vadd.f32 %v1835_v4, %v1389_v40  ;;  %2015 = vtanh.f32 %v1387_v44 }
 0x2cd   : > { %2017 = vtanh.f32 %v1390_v11 }
 0x2ce   : > { %2019 = vtanh.f32 %v1398_v41 }
 0x2d4   : > { %v2014_v26 = vpop.eup %2013 }
 0x2d5   : > { %v1434_v30 = vmul.f32 %v2014_v26, %v1844_v49  ;;  %v2016_v5 = vpop.eup %2015 }
 0x2d6   : > { %v1920_v6 = vpop.f32.mrb[4].mxu1  ;;  %v1432_v47 = vmul.f32 %v2016_v5, %v1844_v49 }
 0x2d7   : > { %v1411_v51 = vadd.f32 %v1920_v6, %v1835_v4  ;;  %v1402_v15 = vpop.f32.mrb[5].mxu1  ;;  %v2018_v31 = vpop.eup %2017  ;;  %1444 = vadd.xlane.f32.xlu0 %v1434_v30 }
 0x2d8   : > { %v1403_v13 = vadd.f32 %v1835_v4, %v1402_v15  ;;  %v1921_v53 = vpop.f32.mrb[6].mxu1  ;;  %v1433_v57 = vmul.f32 %v2018_v31, %v1844_v49  ;;  %v2020_v43 = vpop.eup %2019 }
 0x2d9   : > { %v1405_v24 = vpop.f32.mrb[7].mxu1  ;;  %v1414_v0 = vadd.f32 %v1921_v53, %v1835_v4  ;;  %v1435_v23 = vmul.f32 %v2020_v43, %v1844_v49 }
 0x2da   : > { %2021 = vtanh.f32 %v1403_v13  ;;  %v1406_v14 = vadd.f32 %v1835_v4, %v1405_v24  ;;  %1442 = vadd.xlane.f32.xlu1 %v1433_v57 }
 0x2db   : > { %2023 = vtanh.f32 %v1411_v51  ;;  %1440 = vadd.xlane.f32.xlu0 %v1432_v47 }
 0x2dc   : > { %2025 = vtanh.f32 %v1406_v14 }
 0x2dd   : > { %2027 = vtanh.f32 %v1414_v0 }
 0x2df   : > { %1446 = vadd.xlane.f32.xlu0 %v1435_v23 }
 0x2e4   : > { %v2022_v12 = vpop.eup %2021 }
 0x2e5   : > { %v2024_v22 = vpop.eup %2023  ;;  %v1436_v61 = vmul.f32 %v2022_v12, %v1844_v49 }
 0x2e6   : > { %v2026_v52 = vpop.eup %2025  ;;  %v1438_v36 = vmul.f32 %v2024_v22, %v1844_v49 }
 0x2e7   : > { %1448 = vadd.xlane.f32.xlu1 %v1436_v61  ;;  %v1437_v8 = vmul.f32 %v2026_v52, %v1844_v49  ;;  %v2028_v39 = vpop.eup %2027 }
 0x2e8   : > { %v1439_v28 = vmul.f32 %v2028_v39, %v1844_v49 }
 0x2e9   : > { %1450 = vadd.xlane.f32.xlu0 %v1437_v8 }
 0x2eb   : > { %1452 = vadd.xlane.f32.xlu1 %v1438_v36 }
 0x2ed   : > { %1454 = vadd.xlane.f32.xlu0 %v1439_v28 }
 0x364   : > { %v1445_v62 = vpop.xlane.xlu0 %1444 }
 0x365   : > { %v1468_v38 = vrot.slane %v1445_v62, 4 }
 0x367   : > { %v1469_v42 = vmax.f32 %v1445_v62, %v1468_v38  ;;  %v1443_v27 = vpop.xlane.xlu1 %1442 }
 0x368   : > { %v1462_v2 = vrot.slane %v1443_v27, 4  ;;  %v1441_v48 = vpop.xlane.xlu0 %1440 }
 0x369   : > { %v1470_v16 = vrot.slane %v1469_v42, 2  ;;  %v1456_v20 = vrot.slane %v1441_v48, 4 }
 0x36a   : > { %v1463_v33 = vmax.f32 %v1443_v27, %v1462_v2 }
 0x36b   : > { %v1471_v25 = vmax.f32 %v1469_v42, %v1470_v16  ;;  %v1457_v34 = vmax.f32 %v1441_v48, %v1456_v20 }
 0x36c   : > { %v1464_v59 = vrot.slane %v1463_v33, 2  ;;  %v1447_v58 = vpop.xlane.xlu0 %1446 }
 0x36d   : > { %v1472_v1 = vrot.slane %v1471_v25, 1  ;;  %v1458_v4 = vrot.slane %v1457_v34, 2  ;;  %v1474_v46 = vrot.slane %v1447_v58, 4 }
 0x36e   : > { %v1465_v19 = vmax.f32 %v1463_v33, %v1464_v59 }
 0x36f   : > { %v1473_v60 = vmax.f32 %v1471_v25, %v1472_v1  ;;  %v1459_v44 = vmax.f32 %v1457_v34, %v1458_v4  ;;  %v1475_v37 = vmax.f32 %v1447_v58, %v1474_v46 }
 0x370   : > { %v1466_v40 = vrot.slane %v1465_v19, 1 }
 0x371   : > { %v1506_v11 = vsub.f32 %v1445_v62, %v1473_v60  ;;  %v1460_v41 = vrot.slane %v1459_v44, 1  ;;  %v1476_v49 = vrot.slane %v1475_v37, 2 }
 0x372   : > { %v1467_v26 = vmax.f32 %v1465_v19, %v1466_v40 }
 0x373   : > { %v1516_v15 = vmul.f32 1.442695, %v1506_v11  ;;  %v1461_v13 = vmax.f32 %v1459_v44, %v1460_v41  ;;  %v1477_v53 = vmax.f32 %v1475_v37, %v1476_v49 }
 0x374   : > { %v1449_v6 = vpop.xlane.xlu1 %1448  ;;  %v1505_v5 = vsub.f32 %v1443_v27, %v1467_v26 }
 0x375   : > { %v1480_v51 = vrot.slane %v1449_v6, 4  ;;  %2029 = vpow2.f32 %v1516_v15  ;;  %v1504_v0 = vsub.f32 %v1441_v48, %v1461_v13  ;;  %v1478_v14 = vrot.slane %v1477_v53, 1 }
 0x376   : > { %v1451_v30 = vpop.xlane.xlu0 %1450  ;;  %v1514_v47 = vmul.f32 1.442695, %v1505_v5 }
 0x377   : > { %v1481_v24 = vmax.f32 %v1449_v6, %v1480_v51  ;;  %v1486_v31 = vrot.slane %v1451_v30, 4  ;;  %v1512_v22 = vmul.f32 1.442695, %v1504_v0  ;;  %v1479_v61 = vmax.f32 %v1477_v53, %v1478_v14 }
 0x378   : > { %v1453_v57 = vpop.xlane.xlu1 %1452  ;;  %2031 = vpow2.f32 %v1514_v47 }
 0x379   : > { %v1482_v43 = vrot.slane %v1481_v24, 2  ;;  %v1487_v23 = vmax.f32 %v1451_v30, %v1486_v31  ;;  %v1492_v12 = vrot.slane %v1453_v57, 4  ;;  %2033 = vpow2.f32 %v1512_v22 }
 0x37a   : > { %v1455_v52 = vpop.xlane.xlu0 %1454  ;;  %v1507_v28 = vsub.f32 %v1447_v58, %v1479_v61 }
 0x37b   : > { %v1483_v8 = vmax.f32 %v1481_v24, %v1482_v43  ;;  %v1488_v39 = vrot.slane %v1487_v23, 2  ;;  %v1493_v36 = vmax.f32 %v1453_v57, %v1492_v12  ;;  %v1498_v62 = vrot.slane %v1455_v52, 4 }
 0x37c   : > { %v1518_v2 = vmul.f32 1.442695, %v1507_v28 }
 0x37d   : > { %v1484_v38 = vrot.slane %v1483_v8, 1  ;;  %v1489_v42 = vmax.f32 %v1487_v23, %v1488_v39  ;;  %v1494_v27 = vrot.slane %v1493_v36, 2  ;;  %v1499_v48 = vmax.f32 %v1455_v52, %v1498_v62 }
 0x37e   : > { %2035 = vpow2.f32 %v1518_v2 }
 0x37f   : > { %v1485_v16 = vmax.f32 %v1483_v8, %v1484_v38  ;;  %v1490_v20 = vrot.slane %v1489_v42, 1  ;;  %v1495_v33 = vmax.f32 %v1493_v36, %v1494_v27  ;;  %v1500_v25 = vrot.slane %v1499_v48, 2  ;;  %v2962_v4 = vpop.eup %2029 }
 0x380   : > { %v1540_v19 = vrot.slane %v2962_v4, 4 }
 0x381   : > { %v1508_v34 = vsub.f32 %v1449_v6, %v1485_v16  ;;  %v1491_v59 = vmax.f32 %v1489_v42, %v1490_v20  ;;  %v1496_v1 = vrot.slane %v1495_v33, 1  ;;  %v1501_v46 = vmax.f32 %v1499_v48, %v1500_v25 }
 0x382   : > { %v2965_v40 = vpop.eup %2031  ;;  %v1541_v11 = vadd.f32 %v2962_v4, %v1540_v19 }
 0x383   : > { %v1520_v58 = vmul.f32 1.442695, %v1508_v34  ;;  %v1509_v60 = vsub.f32 %v1451_v30, %v1491_v59  ;;  %v1497_v44 = vmax.f32 %v1495_v33, %v1496_v1  ;;  %v1502_v37 = vrot.slane %v1501_v46, 1  ;;  %v2968_v26 = vpop.eup %2033 }
 0x384   : > { %v1534_v6 = vrot.slane %v2965_v40, 4  ;;  %v1542_v15 = vrot.slane %v1541_v11, 2  ;;  %v1528_v13 = vrot.slane %v2968_v26, 4 }
 0x385   : > { %2037 = vpow2.f32 %v1520_v58  ;;  %v1522_v41 = vmul.f32 1.442695, %v1509_v60  ;;  %v1510_v49 = vsub.f32 %v1453_v57, %v1497_v44  ;;  %v1503_v51 = vmax.f32 %v1501_v46, %v1502_v37 }
 0x386   : > { %v1535_v30 = vadd.f32 %v2965_v40, %v1534_v6  ;;  %v1543_v24 = vadd.f32 %v1542_v15, %v1541_v11  ;;  %v1529_v31 = vadd.f32 %v2968_v26, %v1528_v13 }
 0x387   : > { %2039 = vpow2.f32 %v1522_v41  ;;  %v1524_v53 = vmul.f32 1.442695, %v1510_v49  ;;  %v1511_v5 = vsub.f32 %v1455_v52, %v1503_v51 }
 0x388   : > { %v2974_v0 = vpop.eup %2035  ;;  %v1536_v14 = vrot.slane %v1535_v30, 2  ;;  %v1544_v47 = vrot.slane %v1543_v24, 1  ;;  %v1530_v43 = vrot.slane %v1529_v31, 2 }
 0x389   : > { %2041 = vpow2.f32 %v1524_v53  ;;  %v1526_v57 = vmul.f32 1.442695, %v1511_v5  ;;  %v1546_v23 = vrot.slane %v2974_v0, 4 }
 0x38a   : > { %v1537_v12 = vadd.f32 %v1536_v14, %v1535_v30  ;;  %v1545_v22 = vadd.f32 %v1544_v47, %v1543_v24  ;;  %v1531_v61 = vadd.f32 %v1530_v43, %v1529_v31 }
 0x38b   : > { %2043 = vpow2.f32 %v1526_v57  ;;  %v1547_v8 = vadd.f32 %v2974_v0, %v1546_v23 }
 0x38c   : > { %v1538_v39 = vrot.slane %v1537_v12, 1  ;;  %2045 = vrcp.f32 %v1545_v22  ;;  %v1532_v36 = vrot.slane %v1531_v61, 1 }
 0x38d   : > { %v1548_v28 = vrot.slane %v1547_v8, 2 }
 0x38e   : > { %v1539_v62 = vadd.f32 %v1538_v39, %v1537_v12  ;;  %v1533_v27 = vadd.f32 %v1532_v36, %v1531_v61 }
 0x38f   : > { %v2978_v52 = vpop.eup %2037  ;;  %v1549_v2 = vadd.f32 %v1548_v28, %v1547_v8 }
 0x390   : > { %v1552_v38 = vrot.slane %v2978_v52, 4  ;;  %2047 = vrcp.f32 %v1539_v62 }
 0x391   : > { %v2981_v42 = vpop.eup %2039  ;;  %2049 = vrcp.f32 %v1533_v27  ;;  %v1550_v33 = vrot.slane %v1549_v2, 1 }
 0x392   : > { %v1553_v48 = vadd.f32 %v2978_v52, %v1552_v38  ;;  %v1558_v16 = vrot.slane %v2981_v42, 4 }
 0x393   : > { %v2985_v20 = vpop.eup %2041  ;;  %v1551_v1 = vadd.f32 %v1550_v33, %v1549_v2 }
 0x394   : > { %v1554_v25 = vrot.slane %v1553_v48, 2  ;;  %v1559_v34 = vadd.f32 %v2981_v42, %v1558_v16  ;;  %v1564_v59 = vrot.slane %v2985_v20, 4 }
 0x395   : > { %v2989_v46 = vpop.eup %2043  ;;  %2051 = vrcp.f32 %v1551_v1 }
 0x396   : > { %v1555_v19 = vadd.f32 %v1554_v25, %v1553_v48  ;;  %v1560_v58 = vrot.slane %v1559_v34, 2  ;;  %v1565_v60 = vadd.f32 %v2985_v20, %v1564_v59  ;;  %v1570_v44 = vrot.slane %v2989_v46, 4  ;;  %v2046_v49 = vpop.eup %2045 }
 0x397   : > { %v1586_v51 = vmul.f32 %v2046_v49, %v2962_v4 }
 0x398   : > { %v1556_v37 = vrot.slane %v1555_v19, 1  ;;  %v1561_v11 = vadd.f32 %v1560_v58, %v1559_v34  ;;  %v1566_v41 = vrot.slane %v1565_v60, 2  ;;  %v1571_v6 = vadd.f32 %v2989_v46, %v1570_v44 }
 0x399   : > { %v1594_v14 = vmul.f32 %v1586_v51, %v1271_v10 }
 0x39a   : > { %v1557_v15 = vadd.f32 %v1556_v37, %v1555_v19  ;;  %v1562_v13 = vrot.slane %v1561_v11, 1  ;;  %v1567_v53 = vadd.f32 %v1566_v41, %v1565_v60  ;;  %v1572_v30 = vrot.slane %v1571_v6, 2  ;;  %v2048_v5 = vpop.eup %2047 }
 0x39b   : > { %v2050_v57 = vpop.eup %2049  ;;  %v1585_v47 = vmul.f32 %v2048_v5, %v2965_v40  ;;  %v1612_v61 = vrot.slane %v1594_v14, 4 }
 0x39c   : > { %2053 = vrcp.f32 %v1557_v15  ;;  %v1563_v24 = vadd.f32 %v1562_v13, %v1561_v11  ;;  %v1568_v31 = vrot.slane %v1567_v53, 1  ;;  %v1573_v43 = vadd.f32 %v1572_v30, %v1571_v6 }
 0x39d   : > { %v1584_v23 = vmul.f32 %v2050_v57, %v2968_v26  ;;  %v1593_v4 = vmul.f32 %v1585_v47, %v1270_v35  ;;  %v1613_v26 = vadd.f32 %v1612_v61, %v1594_v14 }
 0x39e   : > { %2055 = vrcp.f32 %v1563_v24  ;;  %v1569_v12 = vadd.f32 %v1568_v31, %v1567_v53  ;;  %v1574_v22 = vrot.slane %v1573_v43, 1 }
 0x39f   : > { %v1592_v8 = vmul.f32 %v1584_v23, %v1269_v17  ;;  %v2052_v39 = vpop.eup %2051  ;;  %v1606_v10 = vrot.slane %v1593_v4, 4  ;;  %v1614_v48 = vrot.slane %v1613_v26, 2 }
 0x3a0   : > { %2057 = vrcp.f32 %v1569_v12  ;;  %v1575_v3 = vadd.f32 %v1574_v22, %v1573_v43  ;;  %v1587_v36 = vmul.f32 %v2052_v39, %v2974_v0 }
 0x3a1   : > { %v1600_v40 = vrot.slane %v1592_v8, 4  ;;  %v1607_v28 = vadd.f32 %v1606_v10, %v1593_v4 }
 0x3a2   : > { %2059 = vrcp.f32 %v1575_v3  ;;  %v1595_v62 = vmul.f32 %v1587_v36, %v1272_v54 }
 0x3a3   : > { %v1601_v45 = vadd.f32 %v1600_v40, %v1592_v8  ;;  %v1608_v35 = vrot.slane %v1607_v28, 2 }
 0x3a4   : > { %v1618_v2 = vrot.slane %v1595_v62, 4 }
 0x3a5   : > { %v1602_v27 = vrot.slane %v1601_v45, 2  ;;  %v1609_v17 = vadd.f32 %v1608_v35, %v1607_v28 }
 0x3a6   : > { %v2054_v38 = vpop.eup %2053  ;;  %v1619_v25 = vadd.f32 %v1618_v2, %v1595_v62 }
 0x3a7   : > { %v1588_v63 = vmul.f32 %v2054_v38, %v2978_v52  ;;  %v1603_v33 = vadd.f32 %v1602_v27, %v1601_v45  ;;  %v1610_v54 = vrot.slane %v1609_v17, 1  ;;  %v1615_v52 = vadd.f32 %v1614_v48, %v1613_v26 }
 0x3a8   : > { %v2056_v16 = vpop.eup %2055  ;;  %v1620_v1 = vrot.slane %v1619_v25, 2 }
 0x3a9   : > { %v1589_v0 = vmul.f32 %v2056_v16, %v2981_v42  ;;  %v1596_v34 = vmul.f32 %v1588_v63, %v1273_v21  ;;  %v1604_v50 = vrot.slane %v1603_v33, 1  ;;  %v1611_v49 = vadd.f32 %v1610_v54, %v1609_v17 }
 0x3aa   : > { %v2058_v59 = vpop.eup %2057  ;;  %v1621_v44 = vadd.f32 %v1620_v1, %v1619_v25  ;;  %v1616_v51 = vrot.slane %v1615_v52, 1 }
 0x3ab   : > { %v1590_v19 = vmul.f32 %v2058_v59, %v2985_v20  ;;  %v1597_v58 = vmul.f32 %v1589_v0, %v1274_v18  ;;  %v1624_v60 = vrot.slane %v1596_v34, 4  ;;  %v1605_v21 = vadd.f32 %v1604_v50, %v1603_v33 }
 0x3ac   : > { %v2060_v37 = vpop.eup %2059  ;;  %v1622_v6 = vrot.slane %v1621_v44, 1 }
 0x3ad   : > { %v1598_v11 = vmul.f32 %v1590_v19, %v1275_v56  ;;  %v1625_v42 = vadd.f32 %v1624_v60, %v1596_v34  ;;  %v1630_v41 = vrot.slane %v1597_v58, 4  ;;  %v1591_v7 = vmul.f32 %v2060_v37, %v2989_v46 }
 0x3ae   : > { %v1623_v9 = vadd.f32 %v1622_v6, %v1621_v44  ;;  %v1657_v5 = vsel %vm1656_vm15, %v1611_v49, %v1605_v21  ;;  %v1617_v46 = vadd.f32 %v1616_v51, %v1615_v52 }
 0x3af   : > { %v1626_v20 = vrot.slane %v1625_v42, 2  ;;  %v1631_v15 = vadd.f32 %v1630_v41, %v1597_v58  ;;  %v1636_v55 = vrot.slane %v1598_v11, 4  ;;  %v1599_v18 = vmul.f32 %v1591_v7, %v1276_v32 }
 0x3b0   : > { %v1659_v32 = vsel %vm1658_vm0, %v1617_v46, %v1657_v5 }
 0x3b1   : > { %v1627_v13 = vadd.f32 %v1626_v20, %v1625_v42  ;;  %v1632_v53 = vrot.slane %v1631_v15, 2  ;;  %v1637_v30 = vadd.f32 %v1636_v55, %v1598_v11  ;;  %v1642_v56 = vrot.slane %v1599_v18, 4 }
 0x3b2   : > { %v1661_v12 = vsel %vm1660_vm1, %v1623_v9, %v1659_v32 }
 0x3b3   : > { %v1628_v24 = vrot.slane %v1627_v13, 1  ;;  %v1633_v31 = vadd.f32 %v1632_v53, %v1631_v15  ;;  %v1638_v14 = vrot.slane %v1637_v30, 2  ;;  %v1643_v57 = vadd.f32 %v1642_v56, %v1599_v18 }
 0x3b5   : > { %v1629_v47 = vadd.f32 %v1628_v24, %v1627_v13  ;;  %v1634_v43 = vrot.slane %v1633_v31, 1  ;;  %v1639_v29 = vadd.f32 %v1638_v14, %v1637_v30  ;;  %v1644_v23 = vrot.slane %v1643_v57, 2 }
 0x3b7   : > { %v1635_v4 = vadd.f32 %v1634_v43, %v1633_v31  ;;  %v1640_v22 = vrot.slane %v1639_v29, 1  ;;  %v1645_v61 = vadd.f32 %v1644_v23, %v1643_v57  ;;  %v1663_v39 = vsel %vm1662_vm2, %v1629_v47, %v1661_v12 }
 0x3b9   : > { %v1641_v8 = vadd.f32 %v1640_v22, %v1639_v29  ;;  %v1646_v3 = vrot.slane %v1645_v61, 1  ;;  %v1665_v10 = vsel %vm1664_vm3, %v1635_v4, %v1663_v39 }
 0x3bb   : > { %v1647_v36 = vadd.f32 %v1646_v3, %v1645_v61  ;;  %v1667_v40 = vsel %vm1666_vm4, %v1641_v8, %v1665_v10 }
 0x3bd   : > { %v1669_v28 = vsel %vm1668_vm5, %v1647_v36, %v1667_v40 }
 0x3be   : > { %1671 = vst [vmem:[%s296_s8] sm:$0xff] %v1669_v28 }
 0x3bf   : > { %2160 = shalt.err (!%p2157_p2)
}
 0x3c0   : > { %s2161_s18 = scalar_lea.hbm %s3025_s14, 128  ;;  %s2165_s12 = scalar_lea.hbm %s3075_s6, 256 }
 0x3c1   : > { %p2162_p13 = scmp.ne.s32.totalorder %s3025_s14, %s2161_s18  ;;  %p2166_p4 = scmp.lt.u32.totalorder %s3025_s14, %s3075_s6 }
 0x3c2   : > { %p2167_p5 = scmp.lt.u32.totalorder %s2165_s12, %s2161_s18  ;;  %p2169_p11 = scmp.lt.u32.totalorder %s2161_s18, %s3025_s14 }
 0x3c3   : > { %p2163_p6 = pnand %p2162_p13, %p3139_p0 }
 0x3c4   : > { %p2168_p8 = por %p2167_p5, %p2166_p4 }
 0x3c5   : > { %p2164_p10 = pneg %p2163_p6 }
 0x3c6   : > { %p2170_p1 = por %p2169_p11, %p2168_p8 }
 0x3c8   : > { %p2171_p3 = pnand %p2170_p1, %p2164_p10 }
 0x3ca   : > { %2174 = shalt.err (!%p2171_p3)
}
 0x3cb   : > { %1932 = dma.vmem_to_hbm [thread:$0]  (%p3139_p0), %s3027_s13, 128, %s3025_s14, %s1673_s27  }
 0x3cc PF: > { %s1698_s8 = sand.u32 1, %s2205_s21   ;;  %p3140_p7 = scmp.ne.s32.totalorder %s3084_s28, 0 }
 0x3cd   : > { %p3141_p9 = scmp.ge.s32.totalorder %s2217_s24, 2  ;;  %s1699_s10 = scalar_lea.sflag [#allocation4], %s1698_s8 }
 0x3cf   : > { %p1946_p12 = pnand %p3141_p9, %p3140_p7 }
 0x3d1   : > { %2200 = dma.done.wait (!%p1946_p12), %s1699_s10, 128  }
 0x3d2   : > { %2202 = vsyncadd (!%p1946_p12), %s1699_s10, 4294967168  ;;  %p20_p2 = scmp.ge.s32.totalorder %s2374_s26, 4   ;;  %s3142_s21 = smov %s2209_s22 }
 0x3d3   : > { %s3143_s22 = smov %s2213_s23  ;;  %s3144_s23 = smov %s2390_s11 }
 0x3d4   : > { %s3145_s24 = smov %s2374_s26  ;;  %22 = sbr.rel (!%p20_p2) target bundleno = 6 (0x6), region = 97 }
 0x3db   :  { %1704 = vsyncpa [#allocation3], 1 }
 0x3dc   :  { %1706 = vsyncpa [#allocation3 + $0x1], 1 }
 0x3dd   :  { %1707 = vsyncpa [#allocation6], 1 }
 0x3de   :  { %1708 = vsyncpa [#allocation4], 1 }
 0x3df   :  { %1710 = vsyncpa [#allocation4 + $0x1], 1 }

</bundles_post_ra>
